<compile_context>
chip_gen: v7x
topology: tpu7x:2x2x1
jax: 0.10.0
libtpu: 0.0.40
codegen_flags: <defaults>
</compile_context>

<pallas_src>
import functools

import jax
import jax.numpy as jnp
from jax.scipy.linalg import block_diag
from jax.experimental import pallas as pl
from jax.experimental.pallas import tpu as pltpu


def _swish(x):
    return x * jax.nn.sigmoid(x)


# ----------------------------------------------------------------------------
# The fused Pallas kernel
# ----------------------------------------------------------------------------
def _interaction_block_kernel(*refs, num_layers):
    (x_ref, feat_ref, g_ref, s_ref, rep3_ref,
     w1_ref, b1_ref, w2_ref, b2_ref,
     wf1_ref, wf2_ref,
     wl_ref, bl_ref, wr_ref,
     w012_ref, b012_ref) = refs[:16]
    tail = refs[16:-1]
    o_ref = refs[-1]

    def dot(a, b):
        return jnp.dot(a, b, preferred_element_type=jnp.float32)

    x = x_ref[...]
    x_lin_1 = _swish(dot(x, w1_ref[...]) + b1_ref[...])          # [N, C]
    x_lin_2 = _swish(dot(x, w2_ref[...]) + b2_ref[...])          # [N, C]

    # Three TwoLinear feature embedders (bias=False, act=False) fused via
    # block-diagonal weights: [E, F0+F1+F2] -> [E, 3M] -> [E, 3C]
    f_cat = dot(dot(feat_ref[...], wf1_ref[...]), wf2_ref[...])  # [E, 3C]

    # One shared gather of source-node features, replicated to 3C lanes on the
    # MXU (rep3 = [I|I|I]); Hadamard message; ONE fused scatter-add for 3 convs.
    x_j = dot(g_ref[...], x_lin_1)                               # [E, C]
    msg = f_cat * dot(x_j, rep3_ref[...])                        # [E, 3C]
    agg = dot(s_ref[...], msg)                                   # [N, 3C]

    # conv{0,1,2}: lin_l (block-diag) + bias + lin_r (concatenated, no bias)
    h = dot(agg, wl_ref[...]) + bl_ref[...] + dot(x_lin_1, wr_ref[...])
    # lin0|lin1|lin2 fused (block-diag) + swish; dropout(p=0) == identity
    h = _swish(dot(h, w012_ref[...]) + b012_ref[...])            # [N, 3C]

    i = 0
    for _ in range(num_layers):          # lins_cat: [3C->C], then [C->C]...
        h = _swish(dot(h, tail[i][...]) + tail[i + 1][...])
        i += 2
    h = h + x_lin_2                      # residual
    for _ in range(num_layers - 1):      # lins: [C->C]
        h = _swish(dot(h, tail[i][...]) + tail[i + 1][...])
        i += 2
    # final projection (bias, no activation)
    o_ref[...] = (dot(h, tail[i][...]) + tail[i + 1][...]).astype(o_ref.dtype)


def interaction_block_forward(fp, x, feature0, feature1, pos_emb, edge_index,
                              num_layers):
    n, _ = x.shape
    src, dst = edge_index[0], edge_index[1]          # PyG: row = source j, col = target i
    node_ids = jnp.arange(n, dtype=edge_index.dtype)
    gather = (src[:, None] == node_ids[None, :]).astype(jnp.float32)    # [E, N]
    scatter = (dst[None, :] == node_ids[:, None]).astype(jnp.float32)   # [N, E] (no transpose op)
    feat_cat = jnp.concatenate([feature0, feature1, pos_emb], axis=1)   # [E, F0+F1+F2]

    inputs = [x, feat_cat, gather, scatter, fp["rep3"],
              fp["w1"], fp["b1"], fp["w2"], fp["b2"],
              fp["wf1"], fp["wf2"],
              fp["wl"], fp["bl"], fp["wr"],
              fp["w012"], fp["b012"]]
    for w, b in fp["lins_cat"]:
        inputs += [w, b]
    for w, b in fp["lins"]:
        inputs += [w, b]
    inputs += [fp["final_w"], fp["final_b"]]

    out_channels = fp["final_w"].shape[1]
    in_specs = [pl.BlockSpec(a.shape, lambda i: (0, 0)) for a in inputs]

    return pl.pallas_call(
        functools.partial(_interaction_block_kernel, num_layers=num_layers),
        out_shape=jax.ShapeDtypeStruct((n, out_channels), jnp.float32),
        grid=(1,),
        in_specs=in_specs,
        out_specs=pl.BlockSpec((n, out_channels), lambda i: (0, 0)),
        compiler_params=pltpu.CompilerParams(dimension_semantics=("arbitrary",)),
    )(*inputs)


# ----------------------------------------------------------------------------
# Parameter construction (deterministic glorot-uniform, like PyG inits.glorot)
# ----------------------------------------------------------------------------
def _glorot(key, fan_in, fan_out):
    a = (6.0 / (fan_in + fan_out)) ** 0.5
    # stored pre-transposed as [in, out] so kernels compute x @ w
    return jax.random.uniform(key, (fan_in, fan_out), jnp.float32, -a, a)


def init_params(key, hidden, output, num_radial, num_spherical, num_layers,
                mid_emb, num_pos_emb, level="allatom"):
    keys = iter(jax.random.split(key, 64))
    z = lambda c: jnp.zeros((c,), jnp.float32)
    p = {}

    for name in ("lin_1", "lin_2", "lin0", "lin1", "lin2"):
        p[f"{name}_w"] = _glorot(next(keys), hidden, hidden)
        p[f"{name}_b"] = z(hidden)

    for name in ("conv0", "conv1", "conv2"):
        p[f"{name}_wl"] = _glorot(next(keys), hidden, hidden)
        p[f"{name}_bl"] = z(hidden)
        p[f"{name}_wr"] = _glorot(next(keys), hidden, hidden)

    f0_in = num_radial * num_spherical ** 2
    f1_in = (num_radial * num_spherical if level == "aminoacid"
             else 3 * num_radial * num_spherical)
    p["lf0_w1"] = _glorot(next(keys), f0_in, mid_emb)
    p["lf0_w2"] = _glorot(next(keys), mid_emb, hidden)
    p["lf1_w1"] = _glorot(next(keys), f1_in, mid_emb)
    p["lf1_w2"] = _glorot(next(keys), mid_emb, hidden)
    p["lf2_w1"] = _glorot(next(keys), num_pos_emb, mid_emb)
    p["lf2_w2"] = _glorot(next(keys), mid_emb, hidden)

    p["lins_cat_w"] = [_glorot(next(keys), 3 * hidden, hidden)]
    p["lins_cat_b"] = [z(hidden)]
    for _ in range(num_layers - 1):
        p["lins_cat_w"].append(_glorot(next(keys), hidden, hidden))
        p["lins_cat_b"].append(z(hidden))

    p["lins_w"], p["lins_b"] = [], []
    for _ in range(num_layers - 1):
        p["lins_w"].append(_glorot(next(keys), hidden, hidden))
        p["lins_b"].append(z(hidden))

    p["final_w"] = _glorot(next(keys), hidden, output)
    p["final_b"] = z(output)
    return p


def pack_fused_params(p):
    """Build the batched / block-diagonal operands the fused kernel consumes."""
    hidden = p["lin_1_w"].shape[0]
    fp = {
        "w1": p["lin_1_w"], "b1": p["lin_1_b"].reshape(1, -1),
        "w2": p["lin_2_w"], "b2": p["lin_2_b"].reshape(1, -1),
        # three TwoLinear embedders -> block-diagonal weights (bias=False)
        "wf1": block_diag(p["lf0_w1"], p["lf1_w1"], p["lf2_w1"]),
        "wf2": block_diag(p["lf0_w2"], p["lf1_w2"], p["lf2_w2"]),
        # three EdgeGraphConvs fused along 3C lanes
        "wl": block_diag(p["conv0_wl"], p["conv1_wl"], p["conv2_wl"]),
        "bl": jnp.concatenate([p["conv0_bl"], p["conv1_bl"], p["conv2_bl"]]).reshape(1, -1),
        "wr": jnp.concatenate([p["conv0_wr"], p["conv1_wr"], p["conv2_wr"]], axis=1),
        # lin0 | lin1 | lin2 fused
        "w012": block_diag(p["lin0_w"], p["lin1_w"], p["lin2_w"]),
        "b012": jnp.concatenate([p["lin0_b"], p["lin1_b"], p["lin2_b"]]).reshape(1, -1),
        # [I | I | I]: replicates x_j to 3C lanes on the MXU (avoids lane concat)
        "rep3": jnp.concatenate([jnp.eye(hidden, dtype=jnp.float32)] * 3, axis=1),
        "lins_cat": [(w, b.reshape(1, -1))
                     for w, b in zip(p["lins_cat_w"], p["lins_cat_b"])],
        "lins": [(w, b.reshape(1, -1))
                 for w, b in zip(p["lins_w"], p["lins_b"])],
        "final_w": p["final_w"], "final_b": p["final_b"].reshape(1, -1),
    }
    return fp


# ----------------------------------------------------------------------------
# Pure-JAX reference (mirrors the PyTorch module layer by layer)
# ----------------------------------------------------------------------------
def _reference_forward(p, x, feature0, feature1, pos_emb, edge_index):
    src, dst = edge_index[0], edge_index[1]
    n = x.shape[0]

    def lin(h, w, b=None):
        y = h @ w
        return y if b is None else y + b

    def conv(xin, feat, wl, bl, wr):
        msg = feat * xin[src]
        agg = jax.ops.segment_sum(msg, dst, num_segments=n)
        return lin(agg, wl, bl) + lin(xin, wr)

    x1 = _swish(lin(x, p["lin_1_w"], p["lin_1_b"]))
    x2 = _swish(lin(x, p["lin_2_w"], p["lin_2_b"]))

    f0 = lin(lin(feature0, p["lf0_w1"]), p["lf0_w2"])
    h0 = _swish(lin(conv(x1, f0, p["conv0_wl"], p["conv0_bl"], p["conv0_wr"]),
                    p["lin0_w"], p["lin0_b"]))
    f1 = lin(lin(feature1, p["lf1_w1"]), p["lf1_w2"])
    h1 = _swish(lin(conv(x1, f1, p["conv1_wl"], p["conv1_bl"], p["conv1_wr"]),
                    p["lin1_w"], p["lin1_b"]))
    f2 = lin(lin(pos_emb, p["lf2_w1"]), p["lf2_w2"])
    h2 = _swish(lin(conv(x1, f2, p["conv2_wl"], p["conv2_bl"], p["conv2_wr"]),
                    p["lin2_w"], p["lin2_b"]))

    h = jnp.concatenate([h0, h1, h2], axis=1)
    for w, b in zip(p["lins_cat_w"], p["lins_cat_b"]):
        h = _swish(lin(h, w, b))
    h = h + x2
    for w, b in zip(p["lins_w"], p["lins_b"]):
        h = _swish(lin(h, w, b))
    return lin(h, p["final_w"], p["final_b"])


if __name__ == "__main__":
    # small synthetic configuration
    hidden_channels = 32
    output_channels = 32
    num_radial = 4
    num_spherical = 3
    num_layers = 3
    mid_emb = 16
    num_pos_emb = 16
    level = "allatom"

    N = 16    # nodes
    E = 48    # edges

    key = jax.random.PRNGKey(0)
    kp, kx, kf0, kf1, kpe, ke = jax.random.split(key, 6)

    params = init_params(kp, hidden_channels, output_channels, num_radial,
                         num_spherical, num_layers, mid_emb, num_pos_emb, level)
    fused_params = pack_fused_params(params)

    x = jax.random.normal(kx, (N, hidden_channels), jnp.float32)
    feature0 = jax.random.normal(kf0, (E, num_radial * num_spherical ** 2), jnp.float32)
    feature1 = jax.random.normal(kf1, (E, 3 * num_radial * num_spherical), jnp.float32)
    pos_emb = jax.random.normal(kpe, (E, num_pos_emb), jnp.float32)
    edge_index = jax.random.randint(ke, (2, E), 0, N, dtype=jnp.int32)

    fwd = jax.jit(functools.partial(interaction_block_forward,
                                    num_layers=num_layers))
    out = fwd(fused_params, x, feature0, feature1, pos_emb, edge_index)
    out = jax.block_until_ready(out)

    assert out.shape == (N, output_channels)
    assert bool(jnp.all(jnp.isfinite(out)))

    ref = _reference_forward(params, x, feature0, feature1, pos_emb, edge_index)
    ref = jax.block_until_ready(ref)
    assert bool(jnp.allclose(out, ref, rtol=5e-2, atol=5e-2)), (
        "fused kernel deviates from reference")

    print("KERNEL_OK")
</pallas_src>

<mosaic_0001>
module attributes {stable_mosaic.version = 11 : i64} {
  func.func @_interaction_block_kernel(%arg0: i32, %arg1: memref<16x32xf32, #tpu.memory_space<vmem>>, %arg2: memref<48x88xf32, #tpu.memory_space<vmem>>, %arg3: memref<48x16xf32, #tpu.memory_space<vmem>>, %arg4: memref<16x48xf32, #tpu.memory_space<vmem>>, %arg5: memref<32x96xf32, #tpu.memory_space<vmem>>, %arg6: memref<32x32xf32, #tpu.memory_space<vmem>>, %arg7: memref<1x32xf32, #tpu.memory_space<vmem>>, %arg8: memref<32x32xf32, #tpu.memory_space<vmem>>, %arg9: memref<1x32xf32, #tpu.memory_space<vmem>>, %arg10: memref<88x48xf32, #tpu.memory_space<vmem>>, %arg11: memref<48x96xf32, #tpu.memory_space<vmem>>, %arg12: memref<96x96xf32, #tpu.memory_space<vmem>>, %arg13: memref<1x96xf32, #tpu.memory_space<vmem>>, %arg14: memref<32x96xf32, #tpu.memory_space<vmem>>, %arg15: memref<96x96xf32, #tpu.memory_space<vmem>>, %arg16: memref<1x96xf32, #tpu.memory_space<vmem>>, %arg17: memref<96x32xf32, #tpu.memory_space<vmem>>, %arg18: memref<1x32xf32, #tpu.memory_space<vmem>>, %arg19: memref<32x32xf32, #tpu.memory_space<vmem>>, %arg20: memref<1x32xf32, #tpu.memory_space<vmem>>, %arg21: memref<32x32xf32, #tpu.memory_space<vmem>>, %arg22: memref<1x32xf32, #tpu.memory_space<vmem>>, %arg23: memref<32x32xf32, #tpu.memory_space<vmem>>, %arg24: memref<1x32xf32, #tpu.memory_space<vmem>>, %arg25: memref<32x32xf32, #tpu.memory_space<vmem>>, %arg26: memref<1x32xf32, #tpu.memory_space<vmem>>, %arg27: memref<32x32xf32, #tpu.memory_space<vmem>>, %arg28: memref<1x32xf32, #tpu.memory_space<vmem>>, %arg29: memref<16x32xf32, #tpu.memory_space<vmem>>) attributes {dimension_semantics = [#tpu.dimension_semantics<arbitrary>], iteration_bounds = array<i64: 1>, scalar_prefetch = 0 : i64, scratch_operands = 0 : i64, tpu.core_type = #tpu.core_type<tc>, window_params = [{pipeline_mode = #tpu.pipeline_mode<synchronous>, transform_indices = @transform_0, window_bounds = array<i64: 16, 32>}, {pipeline_mode = #tpu.pipeline_mode<synchronous>, transform_indices = @transform_1, window_bounds = array<i64: 48, 88>}, {pipeline_mode = #tpu.pipeline_mode<synchronous>, transform_indices = @transform_2, window_bounds = array<i64: 48, 16>}, {pipeline_mode = #tpu.pipeline_mode<synchronous>, transform_indices = @transform_3, window_bounds = array<i64: 16, 48>}, {pipeline_mode = #tpu.pipeline_mode<synchronous>, transform_indices = @transform_4, window_bounds = array<i64: 32, 96>}, {pipeline_mode = #tpu.pipeline_mode<synchronous>, transform_indices = @transform_5, window_bounds = array<i64: 32, 32>}, {pipeline_mode = #tpu.pipeline_mode<synchronous>, transform_indices = @transform_6, window_bounds = array<i64: 1, 32>}, {pipeline_mode = #tpu.pipeline_mode<synchronous>, transform_indices = @transform_7, window_bounds = array<i64: 32, 32>}, {pipeline_mode = #tpu.pipeline_mode<synchronous>, transform_indices = @transform_8, window_bounds = array<i64: 1, 32>}, {pipeline_mode = #tpu.pipeline_mode<synchronous>, transform_indices = @transform_9, window_bounds = array<i64: 88, 48>}, {pipeline_mode = #tpu.pipeline_mode<synchronous>, transform_indices = @transform_10, window_bounds = array<i64: 48, 96>}, {pipeline_mode = #tpu.pipeline_mode<synchronous>, transform_indices = @transform_11, window_bounds = array<i64: 96, 96>}, {pipeline_mode = #tpu.pipeline_mode<synchronous>, transform_indices = @transform_12, window_bounds = array<i64: 1, 96>}, {pipeline_mode = #tpu.pipeline_mode<synchronous>, transform_indices = @transform_13, window_bounds = array<i64: 32, 96>}, {pipeline_mode = #tpu.pipeline_mode<synchronous>, transform_indices = @transform_14, window_bounds = array<i64: 96, 96>}, {pipeline_mode = #tpu.pipeline_mode<synchronous>, transform_indices = @transform_15, window_bounds = array<i64: 1, 96>}, {pipeline_mode = #tpu.pipeline_mode<synchronous>, transform_indices = @transform_16, window_bounds = array<i64: 96, 32>}, {pipeline_mode = #tpu.pipeline_mode<synchronous>, transform_indices = @transform_17, window_bounds = array<i64: 1, 32>}, {pipeline_mode = #tpu.pipeline_mode<synchronous>, transform_indices = @transform_18, window_bounds = array<i64: 32, 32>}, {pipeline_mode = #tpu.pipeline_mode<synchronous>, transform_indices = @transform_19, window_bounds = array<i64: 1, 32>}, {pipeline_mode = #tpu.pipeline_mode<synchronous>, transform_indices = @transform_20, window_bounds = array<i64: 32, 32>}, {pipeline_mode = #tpu.pipeline_mode<synchronous>, transform_indices = @transform_21, window_bounds = array<i64: 1, 32>}, {pipeline_mode = #tpu.pipeline_mode<synchronous>, transform_indices = @transform_22, window_bounds = array<i64: 32, 32>}, {pipeline_mode = #tpu.pipeline_mode<synchronous>, transform_indices = @transform_23, window_bounds = array<i64: 1, 32>}, {pipeline_mode = #tpu.pipeline_mode<synchronous>, transform_indices = @transform_24, window_bounds = array<i64: 32, 32>}, {pipeline_mode = #tpu.pipeline_mode<synchronous>, transform_indices = @transform_25, window_bounds = array<i64: 1, 32>}, {pipeline_mode = #tpu.pipeline_mode<synchronous>, transform_indices = @transform_26, window_bounds = array<i64: 32, 32>}, {pipeline_mode = #tpu.pipeline_mode<synchronous>, transform_indices = @transform_27, window_bounds = array<i64: 1, 32>}, {pipeline_mode = #tpu.pipeline_mode<synchronous>, transform_indices = @transform_28, window_bounds = array<i64: 16, 32>}]} {
    %c0 = arith.constant 0 : index
    %c0_0 = arith.constant 0 : index
    %0 = vector.load %arg1[%c0, %c0_0] : memref<16x32xf32, #tpu.memory_space<vmem>>, vector<16x32xf32>
    %c0_1 = arith.constant 0 : index
    %c0_2 = arith.constant 0 : index
    %1 = vector.load %arg6[%c0_1, %c0_2] : memref<32x32xf32, #tpu.memory_space<vmem>>, vector<32x32xf32>
    %cst = arith.constant dense<0.000000e+00> : vector<16x32xf32>
    %2 = tpu.matmul %0, %1, %cst {dimension_numbers = #tpu.dot_dimension_numbers<[1], [0], [0], [1], [0, 0, 1, 1], [], []>} : vector<16x32xf32>, vector<32x32xf32>, vector<16x32xf32> -> vector<16x32xf32>
    %c0_3 = arith.constant 0 : index
    %c0_4 = arith.constant 0 : index
    %3 = vector.load %arg7[%c0_3, %c0_4] : memref<1x32xf32, #tpu.memory_space<vmem>>, vector<1x32xf32>
    %4 = vector.broadcast %3 : vector<1x32xf32> to vector<16x32xf32>
    %5 = arith.addf %2, %4 : vector<16x32xf32>
    %6 = arith.negf %5 : vector<16x32xf32>
    %7 = math.exp %6 : vector<16x32xf32>
    %cst_5 = arith.constant 1.000000e+00 : f32
    %8 = vector.broadcast %cst_5 : f32 to vector<16x32xf32>
    %9 = arith.addf %8, %7 : vector<16x32xf32>
    %10 = arith.divf %8, %9 : vector<16x32xf32>
    %11 = arith.mulf %5, %10 : vector<16x32xf32>
    %c0_6 = arith.constant 0 : index
    %c0_7 = arith.constant 0 : index
    %12 = vector.load %arg8[%c0_6, %c0_7] : memref<32x32xf32, #tpu.memory_space<vmem>>, vector<32x32xf32>
    %cst_8 = arith.constant dense<0.000000e+00> : vector<16x32xf32>
    %13 = tpu.matmul %0, %12, %cst_8 {dimension_numbers = #tpu.dot_dimension_numbers<[1], [0], [0], [1], [0, 0, 1, 1], [], []>} : vector<16x32xf32>, vector<32x32xf32>, vector<16x32xf32> -> vector<16x32xf32>
    %c0_9 = arith.constant 0 : index
    %c0_10 = arith.constant 0 : index
    %14 = vector.load %arg9[%c0_9, %c0_10] : memref<1x32xf32, #tpu.memory_space<vmem>>, vector<1x32xf32>
    %15 = vector.broadcast %14 : vector<1x32xf32> to vector<16x32xf32>
    %16 = arith.addf %13, %15 : vector<16x32xf32>
    %17 = arith.negf %16 : vector<16x32xf32>
    %18 = math.exp %17 : vector<16x32xf32>
    %cst_11 = arith.constant 1.000000e+00 : f32
    %19 = vector.broadcast %cst_11 : f32 to vector<16x32xf32>
    %20 = arith.addf %19, %18 : vector<16x32xf32>
    %21 = arith.divf %19, %20 : vector<16x32xf32>
    %22 = arith.mulf %16, %21 : vector<16x32xf32>
    %c0_12 = arith.constant 0 : index
    %c0_13 = arith.constant 0 : index
    %23 = vector.load %arg2[%c0_12, %c0_13] : memref<48x88xf32, #tpu.memory_space<vmem>>, vector<48x88xf32>
    %c0_14 = arith.constant 0 : index
    %c0_15 = arith.constant 0 : index
    %24 = vector.load %arg10[%c0_14, %c0_15] : memref<88x48xf32, #tpu.memory_space<vmem>>, vector<88x48xf32>
    %cst_16 = arith.constant dense<0.000000e+00> : vector<48x48xf32>
    %25 = tpu.matmul %23, %24, %cst_16 {dimension_numbers = #tpu.dot_dimension_numbers<[1], [0], [0], [1], [0, 0, 1, 1], [], []>} : vector<48x88xf32>, vector<88x48xf32>, vector<48x48xf32> -> vector<48x48xf32>
    %c0_17 = arith.constant 0 : index
    %c0_18 = arith.constant 0 : index
    %26 = vector.load %arg11[%c0_17, %c0_18] : memref<48x96xf32, #tpu.memory_space<vmem>>, vector<48x96xf32>
    %cst_19 = arith.constant dense<0.000000e+00> : vector<48x96xf32>
    %27 = tpu.matmul %25, %26, %cst_19 {dimension_numbers = #tpu.dot_dimension_numbers<[1], [0], [0], [1], [0, 0, 1, 1], [], []>} : vector<48x48xf32>, vector<48x96xf32>, vector<48x96xf32> -> vector<48x96xf32>
    %c0_20 = arith.constant 0 : index
    %c0_21 = arith.constant 0 : index
    %28 = vector.load %arg3[%c0_20, %c0_21] : memref<48x16xf32, #tpu.memory_space<vmem>>, vector<48x16xf32>
    %cst_22 = arith.constant dense<0.000000e+00> : vector<48x32xf32>
    %29 = tpu.matmul %28, %11, %cst_22 {dimension_numbers = #tpu.dot_dimension_numbers<[1], [0], [0], [1], [0, 0, 1, 1], [], []>} : vector<48x16xf32>, vector<16x32xf32>, vector<48x32xf32> -> vector<48x32xf32>
    %c0_23 = arith.constant 0 : index
    %c0_24 = arith.constant 0 : index
    %30 = vector.load %arg5[%c0_23, %c0_24] : memref<32x96xf32, #tpu.memory_space<vmem>>, vector<32x96xf32>
    %cst_25 = arith.constant dense<0.000000e+00> : vector<48x96xf32>
    %31 = tpu.matmul %29, %30, %cst_25 {dimension_numbers = #tpu.dot_dimension_numbers<[1], [0], [0], [1], [0, 0, 1, 1], [], []>} : vector<48x32xf32>, vector<32x96xf32>, vector<48x96xf32> -> vector<48x96xf32>
    %32 = arith.mulf %27, %31 : vector<48x96xf32>
    %c0_26 = arith.constant 0 : index
    %c0_27 = arith.constant 0 : index
    %33 = vector.load %arg4[%c0_26, %c0_27] : memref<16x48xf32, #tpu.memory_space<vmem>>, vector<16x48xf32>
    %cst_28 = arith.constant dense<0.000000e+00> : vector<16x96xf32>
    %34 = tpu.matmul %33, %32, %cst_28 {dimension_numbers = #tpu.dot_dimension_numbers<[1], [0], [0], [1], [0, 0, 1, 1], [], []>} : vector<16x48xf32>, vector<48x96xf32>, vector<16x96xf32> -> vector<16x96xf32>
    %c0_29 = arith.constant 0 : index
    %c0_30 = arith.constant 0 : index
    %35 = vector.load %arg12[%c0_29, %c0_30] : memref<96x96xf32, #tpu.memory_space<vmem>>, vector<96x96xf32>
    %cst_31 = arith.constant dense<0.000000e+00> : vector<16x96xf32>
    %36 = tpu.matmul %34, %35, %cst_31 {dimension_numbers = #tpu.dot_dimension_numbers<[1], [0], [0], [1], [0, 0, 1, 1], [], []>} : vector<16x96xf32>, vector<96x96xf32>, vector<16x96xf32> -> vector<16x96xf32>
    %c0_32 = arith.constant 0 : index
    %c0_33 = arith.constant 0 : index
    %37 = vector.load %arg13[%c0_32, %c0_33] : memref<1x96xf32, #tpu.memory_space<vmem>>, vector<1x96xf32>
    %38 = vector.broadcast %37 : vector<1x96xf32> to vector<16x96xf32>
    %39 = arith.addf %36, %38 : vector<16x96xf32>
    %c0_34 = arith.constant 0 : index
    %c0_35 = arith.constant 0 : index
    %40 = vector.load %arg14[%c0_34, %c0_35] : memref<32x96xf32, #tpu.memory_space<vmem>>, vector<32x96xf32>
    %cst_36 = arith.constant dense<0.000000e+00> : vector<16x96xf32>
    %41 = tpu.matmul %11, %40, %cst_36 {dimension_numbers = #tpu.dot_dimension_numbers<[1], [0], [0], [1], [0, 0, 1, 1], [], []>} : vector<16x32xf32>, vector<32x96xf32>, vector<16x96xf32> -> vector<16x96xf32>
    %42 = arith.addf %39, %41 : vector<16x96xf32>
    %c0_37 = arith.constant 0 : index
    %c0_38 = arith.constant 0 : index
    %43 = vector.load %arg15[%c0_37, %c0_38] : memref<96x96xf32, #tpu.memory_space<vmem>>, vector<96x96xf32>
    %cst_39 = arith.constant dense<0.000000e+00> : vector<16x96xf32>
    %44 = tpu.matmul %42, %43, %cst_39 {dimension_numbers = #tpu.dot_dimension_numbers<[1], [0], [0], [1], [0, 0, 1, 1], [], []>} : vector<16x96xf32>, vector<96x96xf32>, vector<16x96xf32> -> vector<16x96xf32>
    %c0_40 = arith.constant 0 : index
    %c0_41 = arith.constant 0 : index
    %45 = vector.load %arg16[%c0_40, %c0_41] : memref<1x96xf32, #tpu.memory_space<vmem>>, vector<1x96xf32>
    %46 = vector.broadcast %45 : vector<1x96xf32> to vector<16x96xf32>
    %47 = arith.addf %44, %46 : vector<16x96xf32>
    %48 = arith.negf %47 : vector<16x96xf32>
    %49 = math.exp %48 : vector<16x96xf32>
    %cst_42 = arith.constant 1.000000e+00 : f32
    %50 = vector.broadcast %cst_42 : f32 to vector<16x96xf32>
    %51 = arith.addf %50, %49 : vector<16x96xf32>
    %52 = arith.divf %50, %51 : vector<16x96xf32>
    %53 = arith.mulf %47, %52 : vector<16x96xf32>
    %c0_43 = arith.constant 0 : index
    %c0_44 = arith.constant 0 : index
    %54 = vector.load %arg17[%c0_43, %c0_44] : memref<96x32xf32, #tpu.memory_space<vmem>>, vector<96x32xf32>
    %cst_45 = arith.constant dense<0.000000e+00> : vector<16x32xf32>
    %55 = tpu.matmul %53, %54, %cst_45 {dimension_numbers = #tpu.dot_dimension_numbers<[1], [0], [0], [1], [0, 0, 1, 1], [], []>} : vector<16x96xf32>, vector<96x32xf32>, vector<16x32xf32> -> vector<16x32xf32>
    %c0_46 = arith.constant 0 : index
    %c0_47 = arith.constant 0 : index
    %56 = vector.load %arg18[%c0_46, %c0_47] : memref<1x32xf32, #tpu.memory_space<vmem>>, vector<1x32xf32>
    %57 = vector.broadcast %56 : vector<1x32xf32> to vector<16x32xf32>
    %58 = arith.addf %55, %57 : vector<16x32xf32>
    %59 = arith.negf %58 : vector<16x32xf32>
    %60 = math.exp %59 : vector<16x32xf32>
    %cst_48 = arith.constant 1.000000e+00 : f32
    %61 = vector.broadcast %cst_48 : f32 to vector<16x32xf32>
    %62 = arith.addf %61, %60 : vector<16x32xf32>
    %63 = arith.divf %61, %62 : vector<16x32xf32>
    %64 = arith.mulf %58, %63 : vector<16x32xf32>
    %c0_49 = arith.constant 0 : index
    %c0_50 = arith.constant 0 : index
    %65 = vector.load %arg19[%c0_49, %c0_50] : memref<32x32xf32, #tpu.memory_space<vmem>>, vector<32x32xf32>
    %cst_51 = arith.constant dense<0.000000e+00> : vector<16x32xf32>
    %66 = tpu.matmul %64, %65, %cst_51 {dimension_numbers = #tpu.dot_dimension_numbers<[1], [0], [0], [1], [0, 0, 1, 1], [], []>} : vector<16x32xf32>, vector<32x32xf32>, vector<16x32xf32> -> vector<16x32xf32>
    %c0_52 = arith.constant 0 : index
    %c0_53 = arith.constant 0 : index
    %67 = vector.load %arg20[%c0_52, %c0_53] : memref<1x32xf32, #tpu.memory_space<vmem>>, vector<1x32xf32>
    %68 = vector.broadcast %67 : vector<1x32xf32> to vector<16x32xf32>
    %69 = arith.addf %66, %68 : vector<16x32xf32>
    %70 = arith.negf %69 : vector<16x32xf32>
    %71 = math.exp %70 : vector<16x32xf32>
    %cst_54 = arith.constant 1.000000e+00 : f32
    %72 = vector.broadcast %cst_54 : f32 to vector<16x32xf32>
    %73 = arith.addf %72, %71 : vector<16x32xf32>
    %74 = arith.divf %72, %73 : vector<16x32xf32>
    %75 = arith.mulf %69, %74 : vector<16x32xf32>
    %c0_55 = arith.constant 0 : index
    %c0_56 = arith.constant 0 : index
    %76 = vector.load %arg21[%c0_55, %c0_56] : memref<32x32xf32, #tpu.memory_space<vmem>>, vector<32x32xf32>
    %cst_57 = arith.constant dense<0.000000e+00> : vector<16x32xf32>
    %77 = tpu.matmul %75, %76, %cst_57 {dimension_numbers = #tpu.dot_dimension_numbers<[1], [0], [0], [1], [0, 0, 1, 1], [], []>} : vector<16x32xf32>, vector<32x32xf32>, vector<16x32xf32> -> vector<16x32xf32>
    %c0_58 = arith.constant 0 : index
    %c0_59 = arith.constant 0 : index
    %78 = vector.load %arg22[%c0_58, %c0_59] : memref<1x32xf32, #tpu.memory_space<vmem>>, vector<1x32xf32>
    %79 = vector.broadcast %78 : vector<1x32xf32> to vector<16x32xf32>
    %80 = arith.addf %77, %79 : vector<16x32xf32>
    %81 = arith.negf %80 : vector<16x32xf32>
    %82 = math.exp %81 : vector<16x32xf32>
    %cst_60 = arith.constant 1.000000e+00 : f32
    %83 = vector.broadcast %cst_60 : f32 to vector<16x32xf32>
    %84 = arith.addf %83, %82 : vector<16x32xf32>
    %85 = arith.divf %83, %84 : vector<16x32xf32>
    %86 = arith.mulf %80, %85 : vector<16x32xf32>
    %87 = arith.addf %86, %22 : vector<16x32xf32>
    %c0_61 = arith.constant 0 : index
    %c0_62 = arith.constant 0 : index
    %88 = vector.load %arg23[%c0_61, %c0_62] : memref<32x32xf32, #tpu.memory_space<vmem>>, vector<32x32xf32>
    %cst_63 = arith.constant dense<0.000000e+00> : vector<16x32xf32>
    %89 = tpu.matmul %87, %88, %cst_63 {dimension_numbers = #tpu.dot_dimension_numbers<[1], [0], [0], [1], [0, 0, 1, 1], [], []>} : vector<16x32xf32>, vector<32x32xf32>, vector<16x32xf32> -> vector<16x32xf32>
    %c0_64 = arith.constant 0 : index
    %c0_65 = arith.constant 0 : index
    %90 = vector.load %arg24[%c0_64, %c0_65] : memref<1x32xf32, #tpu.memory_space<vmem>>, vector<1x32xf32>
    %91 = vector.broadcast %90 : vector<1x32xf32> to vector<16x32xf32>
    %92 = arith.addf %89, %91 : vector<16x32xf32>
    %93 = arith.negf %92 : vector<16x32xf32>
    %94 = math.exp %93 : vector<16x32xf32>
    %cst_66 = arith.constant 1.000000e+00 : f32
    %95 = vector.broadcast %cst_66 : f32 to vector<16x32xf32>
    %96 = arith.addf %95, %94 : vector<16x32xf32>
    %97 = arith.divf %95, %96 : vector<16x32xf32>
    %98 = arith.mulf %92, %97 : vector<16x32xf32>
    %c0_67 = arith.constant 0 : index
    %c0_68 = arith.constant 0 : index
    %99 = vector.load %arg25[%c0_67, %c0_68] : memref<32x32xf32, #tpu.memory_space<vmem>>, vector<32x32xf32>
    %cst_69 = arith.constant dense<0.000000e+00> : vector<16x32xf32>
    %100 = tpu.matmul %98, %99, %cst_69 {dimension_numbers = #tpu.dot_dimension_numbers<[1], [0], [0], [1], [0, 0, 1, 1], [], []>} : vector<16x32xf32>, vector<32x32xf32>, vector<16x32xf32> -> vector<16x32xf32>
    %c0_70 = arith.constant 0 : index
    %c0_71 = arith.constant 0 : index
    %101 = vector.load %arg26[%c0_70, %c0_71] : memref<1x32xf32, #tpu.memory_space<vmem>>, vector<1x32xf32>
    %102 = vector.broadcast %101 : vector<1x32xf32> to vector<16x32xf32>
    %103 = arith.addf %100, %102 : vector<16x32xf32>
    %104 = arith.negf %103 : vector<16x32xf32>
    %105 = math.exp %104 : vector<16x32xf32>
    %cst_72 = arith.constant 1.000000e+00 : f32
    %106 = vector.broadcast %cst_72 : f32 to vector<16x32xf32>
    %107 = arith.addf %106, %105 : vector<16x32xf32>
    %108 = arith.divf %106, %107 : vector<16x32xf32>
    %109 = arith.mulf %103, %108 : vector<16x32xf32>
    %c0_73 = arith.constant 0 : index
    %c0_74 = arith.constant 0 : index
    %110 = vector.load %arg27[%c0_73, %c0_74] : memref<32x32xf32, #tpu.memory_space<vmem>>, vector<32x32xf32>
    %cst_75 = arith.constant dense<0.000000e+00> : vector<16x32xf32>
    %111 = tpu.matmul %109, %110, %cst_75 {dimension_numbers = #tpu.dot_dimension_numbers<[1], [0], [0], [1], [0, 0, 1, 1], [], []>} : vector<16x32xf32>, vector<32x32xf32>, vector<16x32xf32> -> vector<16x32xf32>
    %c0_76 = arith.constant 0 : index
    %c0_77 = arith.constant 0 : index
    %112 = vector.load %arg28[%c0_76, %c0_77] : memref<1x32xf32, #tpu.memory_space<vmem>>, vector<1x32xf32>
    %113 = vector.broadcast %112 : vector<1x32xf32> to vector<16x32xf32>
    %114 = arith.addf %111, %113 : vector<16x32xf32>
    %c0_78 = arith.constant 0 : index
    %c0_79 = arith.constant 0 : index
    %115 = vector.load %arg29[%c0_78, %c0_79] : memref<16x32xf32, #tpu.memory_space<vmem>>, vector<16x32xf32>
    tpu.vector_store %arg29[%c0_78, %c0_79], %114 {strides = array<i32>} : memref<16x32xf32, #tpu.memory_space<vmem>>, vector<16x32xf32>,
    return
  }
  func.func @transform_0(%arg0: i32) -> (i32, i32) {
    %c0_i32 = arith.constant 0 : i32
    %c0_i32_0 = arith.constant 0 : i32
    %c0_i32_1 = arith.constant 0 : i32
    return %c0_i32, %c0_i32_0 : i32, i32
  }
  func.func @transform_1(%arg0: i32) -> (i32, i32) {
    %c0_i32 = arith.constant 0 : i32
    %c0_i32_0 = arith.constant 0 : i32
    %c0_i32_1 = arith.constant 0 : i32
    return %c0_i32, %c0_i32_0 : i32, i32
  }
  func.func @transform_2(%arg0: i32) -> (i32, i32) {
    %c0_i32 = arith.constant 0 : i32
    %c0_i32_0 = arith.constant 0 : i32
    %c0_i32_1 = arith.constant 0 : i32
    return %c0_i32, %c0_i32_0 : i32, i32
  }
  func.func @transform_3(%arg0: i32) -> (i32, i32) {
    %c0_i32 = arith.constant 0 : i32
    %c0_i32_0 = arith.constant 0 : i32
    %c0_i32_1 = arith.constant 0 : i32
    return %c0_i32, %c0_i32_0 : i32, i32
  }
  func.func @transform_4(%arg0: i32) -> (i32, i32) {
    %c0_i32 = arith.constant 0 : i32
    %c0_i32_0 = arith.constant 0 : i32
    %c0_i32_1 = arith.constant 0 : i32
    return %c0_i32, %c0_i32_0 : i32, i32
  }
  func.func @transform_5(%arg0: i32) -> (i32, i32) {
    %c0_i32 = arith.constant 0 : i32
    %c0_i32_0 = arith.constant 0 : i32
    %c0_i32_1 = arith.constant 0 : i32
    return %c0_i32, %c0_i32_0 : i32, i32
  }
  func.func @transform_6(%arg0: i32) -> (i32, i32) {
    %c0_i32 = arith.constant 0 : i32
    %c0_i32_0 = arith.constant 0 : i32
    %c0_i32_1 = arith.constant 0 : i32
    return %c0_i32, %c0_i32_0 : i32, i32
  }
  func.func @transform_7(%arg0: i32) -> (i32, i32) {
    %c0_i32 = arith.constant 0 : i32
    %c0_i32_0 = arith.constant 0 : i32
    %c0_i32_1 = arith.constant 0 : i32
    return %c0_i32, %c0_i32_0 : i32, i32
  }
  func.func @transform_8(%arg0: i32) -> (i32, i32) {
    %c0_i32 = arith.constant 0 : i32
    %c0_i32_0 = arith.constant 0 : i32
    %c0_i32_1 = arith.constant 0 : i32
    return %c0_i32, %c0_i32_0 : i32, i32
  }
  func.func @transform_9(%arg0: i32) -> (i32, i32) {
    %c0_i32 = arith.constant 0 : i32
    %c0_i32_0 = arith.constant 0 : i32
    %c0_i32_1 = arith.constant 0 : i32
    return %c0_i32, %c0_i32_0 : i32, i32
  }
  func.func @transform_10(%arg0: i32) -> (i32, i32) {
    %c0_i32 = arith.constant 0 : i32
    %c0_i32_0 = arith.constant 0 : i32
    %c0_i32_1 = arith.constant 0 : i32
    return %c0_i32, %c0_i32_0 : i32, i32
  }
  func.func @transform_11(%arg0: i32) -> (i32, i32) {
    %c0_i32 = arith.constant 0 : i32
    %c0_i32_0 = arith.constant 0 : i32
    %c0_i32_1 = arith.constant 0 : i32
    return %c0_i32, %c0_i32_0 : i32, i32
  }
  func.func @transform_12(%arg0: i32) -> (i32, i32) {
    %c0_i32 = arith.constant 0 : i32
    %c0_i32_0 = arith.constant 0 : i32
    %c0_i32_1 = arith.constant 0 : i32
    return %c0_i32, %c0_i32_0 : i32, i32
  }
  func.func @transform_13(%arg0: i32) -> (i32, i32) {
    %c0_i32 = arith.constant 0 : i32
    %c0_i32_0 = arith.constant 0 : i32
    %c0_i32_1 = arith.constant 0 : i32
    return %c0_i32, %c0_i32_0 : i32, i32
  }
  func.func @transform_14(%arg0: i32) -> (i32, i32) {
    %c0_i32 = arith.constant 0 : i32
    %c0_i32_0 = arith.constant 0 : i32
    %c0_i32_1 = arith.constant 0 : i32
    return %c0_i32, %c0_i32_0 : i32, i32
  }
  func.func @transform_15(%arg0: i32) -> (i32, i32) {
    %c0_i32 = arith.constant 0 : i32
    %c0_i32_0 = arith.constant 0 : i32
    %c0_i32_1 = arith.constant 0 : i32
    return %c0_i32, %c0_i32_0 : i32, i32
  }
  func.func @transform_16(%arg0: i32) -> (i32, i32) {
    %c0_i32 = arith.constant 0 : i32
    %c0_i32_0 = arith.constant 0 : i32
    %c0_i32_1 = arith.constant 0 : i32
    return %c0_i32, %c0_i32_0 : i32, i32
  }
  func.func @transform_17(%arg0: i32) -> (i32, i32) {
    %c0_i32 = arith.constant 0 : i32
    %c0_i32_0 = arith.constant 0 : i32
    %c0_i32_1 = arith.constant 0 : i32
    return %c0_i32, %c0_i32_0 : i32, i32
  }
  func.func @transform_18(%arg0: i32) -> (i32, i32) {
    %c0_i32 = arith.constant 0 : i32
    %c0_i32_0 = arith.constant 0 : i32
    %c0_i32_1 = arith.constant 0 : i32
    return %c0_i32, %c0_i32_0 : i32, i32
  }
  func.func @transform_19(%arg0: i32) -> (i32, i32) {
    %c0_i32 = arith.constant 0 : i32
    %c0_i32_0 = arith.constant 0 : i32
    %c0_i32_1 = arith.constant 0 : i32
    return %c0_i32, %c0_i32_0 : i32, i32
  }
  func.func @transform_20(%arg0: i32) -> (i32, i32) {
    %c0_i32 = arith.constant 0 : i32
    %c0_i32_0 = arith.constant 0 : i32
    %c0_i32_1 = arith.constant 0 : i32
    return %c0_i32, %c0_i32_0 : i32, i32
  }
  func.func @transform_21(%arg0: i32) -> (i32, i32) {
    %c0_i32 = arith.constant 0 : i32
    %c0_i32_0 = arith.constant 0 : i32
    %c0_i32_1 = arith.constant 0 : i32
    return %c0_i32, %c0_i32_0 : i32, i32
  }
  func.func @transform_22(%arg0: i32) -> (i32, i32) {
    %c0_i32 = arith.constant 0 : i32
    %c0_i32_0 = arith.constant 0 : i32
    %c0_i32_1 = arith.constant 0 : i32
    return %c0_i32, %c0_i32_0 : i32, i32
  }
  func.func @transform_23(%arg0: i32) -> (i32, i32) {
    %c0_i32 = arith.constant 0 : i32
    %c0_i32_0 = arith.constant 0 : i32
    %c0_i32_1 = arith.constant 0 : i32
    return %c0_i32, %c0_i32_0 : i32, i32
  }
  func.func @transform_24(%arg0: i32) -> (i32, i32) {
    %c0_i32 = arith.constant 0 : i32
    %c0_i32_0 = arith.constant 0 : i32
    %c0_i32_1 = arith.constant 0 : i32
    return %c0_i32, %c0_i32_0 : i32, i32
  }
  func.func @transform_25(%arg0: i32) -> (i32, i32) {
    %c0_i32 = arith.constant 0 : i32
    %c0_i32_0 = arith.constant 0 : i32
    %c0_i32_1 = arith.constant 0 : i32
    return %c0_i32, %c0_i32_0 : i32, i32
  }
  func.func @transform_26(%arg0: i32) -> (i32, i32) {
    %c0_i32 = arith.constant 0 : i32
    %c0_i32_0 = arith.constant 0 : i32
    %c0_i32_1 = arith.constant 0 : i32
    return %c0_i32, %c0_i32_0 : i32, i32
  }
  func.func @transform_27(%arg0: i32) -> (i32, i32) {
    %c0_i32 = arith.constant 0 : i32
    %c0_i32_0 = arith.constant 0 : i32
    %c0_i32_1 = arith.constant 0 : i32
    return %c0_i32, %c0_i32_0 : i32, i32
  }
  func.func @transform_28(%arg0: i32) -> (i32, i32) {
    %c0_i32 = arith.constant 0 : i32
    %c0_i32_0 = arith.constant 0 : i32
    %c0_i32_1 = arith.constant 0 : i32
    return %c0_i32, %c0_i32_0 : i32, i32
  }
}

</mosaic_0001>

<bundles_post_ra>
// kernel: interaction_block_forward.1
= control target key start
LH: loop header
LB: loop body
LE: loop exit
PB: predicated region body
PF: predicated region fallthrough
CT: control target
= control target key end

     0   :  { %s3169_s0 = inlined_call_operand.vmem [shape: f32[16,32], index: 0, kind: input, shape index: {}]   ;;  %s3170_s1 = inlined_call_operand.vmem [shape: f32[48,88], index: 1, kind: input, shape index: {}]   ;;  %s3171_s2 = inlined_call_operand.vmem [shape: f32[48,16], index: 2, kind: input, shape index: {}]   ;;  %s3172_s3 = inlined_call_operand.vmem [shape: f32[16,48], index: 3, kind: input, shape index: {}]   ;;  %s3173_s4 = inlined_call_operand.vmem [shape: f32[32,96], index: 4, kind: input, shape index: {}]   ;;  %s3174_s5 = inlined_call_operand.vmem [shape: f32[32,32], index: 5, kind: input, shape index: {}]   ;;  %s3175_s6 = inlined_call_operand.vmem [shape: f32[1,32], index: 6, kind: input, shape index: {}]   ;;  %s3176_s7 = inlined_call_operand.vmem [shape: f32[32,32], index: 7, kind: input, shape index: {}]   ;;  %s3177_s8 = inlined_call_operand.vmem [shape: f32[1,32], index: 8, kind: input, shape index: {}]   ;;  %s3178_s9 = inlined_call_operand.vmem [shape: f32[88,48], index: 9, kind: input, shape index: {}]   ;;  %s3179_s10 = inlined_call_operand.vmem [shape: f32[48,96], index: 10, kind: input, shape index: {}]   ;;  %s3180_s11 = inlined_call_operand.vmem [shape: f32[96,96], index: 11, kind: input, shape index: {}]   ;;  %s3181_s12 = inlined_call_operand.vmem [shape: f32[1,96], index: 12, kind: input, shape index: {}]   ;;  %s3182_s13 = inlined_call_operand.vmem [shape: f32[32,96], index: 13, kind: input, shape index: {}]   ;;  %s3183_s14 = inlined_call_operand.vmem [shape: f32[96,96], index: 14, kind: input, shape index: {}]   ;;  %s3184_s15 = inlined_call_operand.vmem [shape: f32[1,96], index: 15, kind: input, shape index: {}]   ;;  %s3185_s16 = inlined_call_operand.vmem [shape: f32[96,32], index: 16, kind: input, shape index: {}]   ;;  %s3186_s17 = inlined_call_operand.vmem [shape: f32[1,32], index: 17, kind: input, shape index: {}]   ;;  %s3187_s18 = inlined_call_operand.vmem [shape: f32[32,32], index: 18, kind: input, shape index: {}]   ;;  %s3188_s19 = inlined_call_operand.vmem [shape: f32[1,32], index: 19, kind: input, shape index: {}]   ;;  %s3189_s20 = inlined_call_operand.vmem [shape: f32[32,32], index: 20, kind: input, shape index: {}]   ;;  %s3190_s21 = inlined_call_operand.vmem [shape: f32[1,32], index: 21, kind: input, shape index: {}]   ;;  %s3191_s22 = inlined_call_operand.vmem [shape: f32[32,32], index: 22, kind: input, shape index: {}]   ;;  %s3192_s23 = inlined_call_operand.vmem [shape: f32[1,32], index: 23, kind: input, shape index: {}]   ;;  %s3193_s24 = inlined_call_operand.vmem [shape: f32[32,32], index: 24, kind: input, shape index: {}]   ;;  %s3194_s25 = inlined_call_operand.vmem [shape: f32[1,32], index: 25, kind: input, shape index: {}]   ;;  %s3195_s26 = inlined_call_operand.vmem [shape: f32[32,32], index: 26, kind: input, shape index: {}]   ;;  %s3196_s27 = inlined_call_operand.vmem [shape: f32[1,32], index: 27, kind: input, shape index: {}]   ;;  %s3197_s28 = inlined_call_operand.hbm [shape: f32[16,32], index: 28, kind: output, shape index: {}]  }
   0x1   :  { %3208 = sst [smem:[#allocation5_spill]] %s3169_s0 }
   0x2   :  { %3209 = sst [smem:[#allocation6_spill]] %s3170_s1 }
   0x3   :  { %3210 = sst [smem:[#allocation7_spill]] %s3171_s2 }
   0x4   :  { %3211 = sst [smem:[#allocation8_spill]] %s3172_s3 }
   0x5   :  { %3212 = sst [smem:[#allocation9_spill]] %s3173_s4 }
   0x6   :  { %3213 = sst [smem:[#allocation10_spill]] %s3174_s5 }
   0x7   :  { %3214 = sst [smem:[#allocation11_spill]] %s3175_s6 }
   0x8   :  { %3215 = sst [smem:[#allocation12_spill]] %s3176_s7 }
   0x9   :  { %3216 = sst [smem:[#allocation13_spill]] %s3177_s8 }
   0xa   :  { %3217 = sst [smem:[#allocation14_spill]] %s3178_s9 }
   0xb   :  { %3218 = sst [smem:[#allocation15_spill]] %s3179_s10 }
   0xc   :  { %3219 = sst [smem:[#allocation16_spill]] %s3180_s11 }
   0xd   :  { %3220 = sst [smem:[#allocation17_spill]] %s3181_s12 }
   0xe   :  { %s3221_s9 = sld [smem:[#allocation10_spill]]  ;;  %vm103_vm0 = vcmask 261120   ;;  %s3222_s7 = sld [smem:[#allocation5_spill]]  ;;  %vm316_vm1 = vcmask 719872  }
   0xf   :  { %s3223_s4 = sld [smem:[#allocation14_spill]]  ;;  %s3224_s2 = sld [smem:[#allocation12_spill]] }
  0x10   :  { %s3225_s6 = sld [smem:[#allocation6_spill]] }
  0x14   :  { %v92_v0 = vld [vmem:[%s3221_s9] sm:$0xff]  ;;  %v93_v1 = vld [vmem:[%s3221_s9 + $0x8] sm:$0xff]  ;;  %v94_v2 = vld [vmem:[%s3221_s9 + $0x10] sm:$0xff] }
  0x15   :  { %v2313_v3 = vpack.c.bf16 %v93_v1, %v92_v0  ;;  %v95_v4 = vld [vmem:[%s3221_s9 + $0x18] sm:$0xff]  ;;  %v90_v5 = vld [vmem:[%s3222_s7] sm:$0xff]  ;;  %v306_v8 = vld [vmem:[%s3223_s4 + $0x8] sm:$0xff] }
  0x16   :  { %v2317_v6 = vpack.c.bf16 %v95_v4, %v94_v2  ;;  %2055 = vmatprep.mubr.msk.f32.mxu0 %vm103_vm0, %v90_v5  ;;  %v305_v7 = vld [vmem:[%s3223_s4] sm:$0xff]  ;;  %2066 = vmatprep.mubr.msk.f32.mxu1 %vm103_vm0, %v90_v5  ;;  %v307_v10 = vld [vmem:[%s3223_s4 + $0x10] sm:$0xff]  ;;  %v308_v11 = vld [vmem:[%s3223_s4 + $0x18] sm:$0xff] }
  0x17   :  { %2314 = vmatprep.subr.bf16.mxu0 %v2313_v3  ;;  %v2329_v9 = vpack.c.bf16 %v306_v8, %v305_v7  ;;  %v91_v12 = vld [vmem:[%s3222_s7 + $0x8] sm:$0xff]  ;;  %v199_v13 = vld [vmem:[%s3224_s2] sm:$0xff]  ;;  %v201_v15 = vld [vmem:[%s3224_s2 + $0x10] sm:$0xff]  ;;  %v2333_v17 = vpack.c.bf16 %v308_v11, %v307_v10 }
  0x18   :  { %2316 = vmatpush3.bf16.msra.mxu0 %v2313_v3  ;;  %v200_v14 = vld [vmem:[%s3224_s2 + $0x8] sm:$0xff]  ;;  %v202_v16 = vld [vmem:[%s3224_s2 + $0x18] sm:$0xff]  ;;  %v299_v18 = vld [vmem:[%s3225_s6] sm:$0xff] }
  0x19   :  { %2318 = vmatprep.subr.bf16.mxu0 %v2317_v6  ;;  %v2321_v19 = vpack.c.bf16 %v200_v14, %v199_v13 }
  0x1c   :  { %2320 = vmatpush3.bf16.msra.mxu0 %v2317_v6 }
  0x1d   :  { %2330 = vmatprep.subr.bf16.mxu0 %v2329_v9 }
  0x1e   :  { %33 = vsyncpa [#allocation3], 0  ;;  %v309_v20 = vld [vmem:[%s3223_s4 + $0x20] sm:$0xff]  ;;  %v310_v21 = vld [vmem:[%s3223_s4 + $0x28] sm:$0xff]  ;;  %v2325_v22 = vpack.c.bf16 %v202_v16, %v201_v15  ;;  %2322 = vmatprep.subr.bf16.mxu1 %v2321_v19  ;;  %s3226_s3 = sld [smem:[#allocation15_spill]]  ;;  %s3227_s30 = sld [smem:[#allocation11_spill]] }
  0x1f   :  { %2056 = vmatmul.mubr.msk.f32.vlgmr.msra.gmra.mrb[0].mxu0 %vm103_vm0, %v91_v12  ;;  %v2337_v23 = vpack.c.bf16 %v310_v21, %v309_v20  ;;  %2324 = vmatpush3.bf16.msra.mxu1 %v2321_v19  ;;  %v311_v24 = vld [vmem:[%s3223_s4 + $0x30] sm:$0xff]  ;;  %v312_v25 = vld [vmem:[%s3223_s4 + $0x38] sm:$0xff]  ;;  %v313_v27 = vld [vmem:[%s3223_s4 + $0x40] sm:$0xff]  ;;  %vm436_vm2 = vcmask 392192   ;;  %s3228_s10 = sld [smem:[#allocation7_spill]]  ;;  %vm556_vm3 = vcmask 130048  }
  0x20   :  { %2332 = vmatpush3.bf16.msra.mxu0 %v2329_v9  ;;  %2091 = vmatprep.mubr.msk.f32.mxu0 %vm316_vm1, %v299_v18  ;;  %v2341_v26 = vpack.c.bf16 %v312_v25, %v311_v24  ;;  %v314_v28 = vld [vmem:[%s3223_s4 + $0x48] sm:$0xff]  ;;  %v315_v30 = vld [vmem:[%s3223_s4 + $0x50] sm:$0xff]  ;;  %v302_v33 = vld [vmem:[%s3225_s6 + $0x18] sm:$0xff]  ;;  %s3229_s7 = sld [smem:[#allocation9_spill]]  ;;  %s3230_s1 = sld [smem:[#allocation8_spill]]  ;;  %vm895_vm4 = vcmask 785408  }
  0x21   :  { %2334 = vmatprep.subr.bf16.mxu0 %v2333_v17  ;;  %2326 = vmatprep.subr.bf16.mxu1 %v2325_v22  ;;  %v2345_v29 = vpack.c.bf16 %v314_v28, %v313_v27  ;;  %v300_v31 = vld [vmem:[%s3225_s6 + $0x8] sm:$0xff]  ;;  %v301_v32 = vld [vmem:[%s3225_s6 + $0x10] sm:$0xff]  ;;  %v303_v34 = vld [vmem:[%s3225_s6 + $0x20] sm:$0xff]  ;;  %s3231_s5 = sld [smem:[#allocation16_spill]]  ;;  %s3232_s9 = sld [smem:[#allocation17_spill]] }
  0x22   :  { %v304_v35 = vld [vmem:[%s3225_s6 + $0x28] sm:$0xff]  ;;  %s3233_s4 = sld [smem:[#allocation13_spill]] }
  0x23   :  { %2328 = vmatpush3.bf16.msra.mxu1 %v2325_v22 }
  0x24   :  { %2336 = vmatpush3.bf16.msra.mxu0 %v2333_v17  ;;  %v430_v36 = vld [vmem:[%s3226_s3] sm:$0xff]  ;;  %v431_v37 = vld [vmem:[%s3226_s3 + $0x8] sm:$0xff]  ;;  %v432_v39 = vld [vmem:[%s3226_s3 + $0x10] sm:$0xff] }
  0x25   :  { %2338 = vmatprep.subr.bf16.mxu0 %v2337_v23  ;;  %v2349_v38 = vpack.c.bf16 %v431_v37, %v430_v36  ;;  %v433_v40 = vld [vmem:[%s3226_s3 + $0x18] sm:$0xff]  ;;  %v434_v42 = vld [vmem:[%s3226_s3 + $0x20] sm:$0xff]  ;;  %v435_v43 = vld [vmem:[%s3226_s3 + $0x28] sm:$0xff] }
  0x26   :  { %2067 = vmatmul.mubr.msk.f32.vlgmr.msra.gmra.mrb[0].mxu1 %vm103_vm0, %v91_v12  ;;  %v2353_v41 = vpack.c.bf16 %v433_v40, %v432_v39  ;;  %v2357_v44 = vpack.c.bf16 %v435_v43, %v434_v42  ;;  %v1828_v45 = vld [vmem:[%s3227_s30] ss:$0 sm:$0xff]  ;;  %v551_v6 = vld [vmem:[%s3228_s10 + $0x8] sm:$0xff]  ;;  %v552_v7 = vld [vmem:[%s3228_s10 + $0x10] sm:$0xff] }
  0x27   :  { %2350 = vmatprep.subr.bf16.mxu1 %v2349_v38  ;;  %v550_v4 = vld [vmem:[%s3228_s10] sm:$0xff]  ;;  %v553_v8 = vld [vmem:[%s3228_s10 + $0x18] sm:$0xff]  ;;  %v555_v10 = vld [vmem:[%s3228_s10 + $0x28] sm:$0xff] }
  0x28   :  { %2340 = vmatpush3.bf16.msra.mxu0 %v2337_v23  ;;  %2352 = vmatpush3.bf16.msra.mxu1 %v2349_v38  ;;  %v554_v9 = vld [vmem:[%s3228_s10 + $0x20] sm:$0xff]  ;;  %v671_v12 = vld [vmem:[%s3229_s7 + $0x8] sm:$0xff]  ;;  %v672_v14 = vld [vmem:[%s3229_s7 + $0x10] sm:$0xff] }
  0x29   :  { %2342 = vmatprep.subr.bf16.mxu0 %v2341_v26  ;;  %2354 = vmatprep.subr.bf16.mxu1 %v2353_v41  ;;  %v670_v11 = vld [vmem:[%s3229_s7] sm:$0xff]  ;;  %v673_v15 = vld [vmem:[%s3229_s7 + $0x18] sm:$0xff]  ;;  %v881_v37 = vld [vmem:[%s3231_s5 + $0x28] sm:$0xff] }
  0x2a   :  { %v2365_v13 = vpack.c.bf16 %v671_v12, %v670_v11  ;;  %v2369_v16 = vpack.c.bf16 %v673_v15, %v672_v14  ;;  %v880_v36 = vld [vmem:[%s3231_s5 + $0x20] sm:$0xff]  ;;  %v882_v39 = vld [vmem:[%s3231_s5 + $0x30] sm:$0xff]  ;;  %v883_v40 = vld [vmem:[%s3231_s5 + $0x38] sm:$0xff] }
  0x2b   :  { %v2393_v38 = vpack.c.bf16 %v881_v37, %v880_v36  ;;  %v884_v42 = vld [vmem:[%s3231_s5 + $0x40] sm:$0xff]  ;;  %v885_v43 = vld [vmem:[%s3231_s5 + $0x48] sm:$0xff]  ;;  %v1067_v11 = vld [vmem:[%s3183_s14 + $0x18] sm:$0xff] }
  0x2c   :  { %2344 = vmatpush3.bf16.msra.mxu0 %v2341_v26  ;;  %2356 = vmatpush3.bf16.msra.mxu1 %v2353_v41  ;;  %v2397_v41 = vpack.c.bf16 %v883_v40, %v882_v39  ;;  %v1069_v14 = vld [vmem:[%s3183_s14 + $0x28] sm:$0xff]  ;;  %v1180_v36 = vld [vmem:[%s3185_s16 + $0x10] sm:$0xff]  ;;  %v1181_v37 = vld [vmem:[%s3185_s16 + $0x18] sm:$0xff] }
  0x2d   :  { %2346 = vmatprep.subr.bf16.mxu0 %v2345_v29  ;;  %2358 = vmatprep.subr.bf16.mxu1 %v2357_v44  ;;  %v1182_v39 = vld [vmem:[%s3185_s16 + $0x20] sm:$0xff]  ;;  %v1183_v40 = vld [vmem:[%s3185_s16 + $0x28] sm:$0xff] }
  0x30   :  { %2348 = vmatpush3.bf16.msra.mxu0 %v2345_v29  ;;  %2360 = vmatpush3.bf16.msra.mxu1 %v2357_v44  ;;  %v793_v29 = vld [vmem:[%s3230_s1] sm:$0xff]  ;;  %v2401_v44 = vpack.c.bf16 %v885_v43, %v884_v42  ;;  %v1184_v42 = vld [vmem:[%s3185_s16 + $0x30] sm:$0xff]  ;;  %v1185_v43 = vld [vmem:[%s3185_s16 + $0x38] sm:$0xff] }
  0x31   :  { %2089 = vmatprep.subr.mxu0 %v315_v30 }
  0x34   :  { %2090 = vmatpush3.msra.mxu0 %v315_v30  ;;  %v876_v30 = vld [vmem:[%s3231_s5] sm:$0xff] }
  0x35   :  { %2092 = vmatmul.mubr.msk.f32.vlgmr.msra.gmra.mrb[2].mxu0 %vm316_vm1, %v300_v31  ;;  %2366 = vmatprep.subr.bf16.mxu0 %v2365_v13  ;;  %v877_v31 = vld [vmem:[%s3231_s5 + $0x8] sm:$0xff] }
  0x36   :  { %2094 = vmatprep.mubr.msk.f32.mxu0 %vm316_vm1, %v301_v32  ;;  %2368 = vmatpush3.bf16.msra.mxu0 %v2365_v13  ;;  %v878_v32 = vld [vmem:[%s3231_s5 + $0x10] sm:$0xff]  ;;  %v1068_v13 = vld [vmem:[%s3183_s14 + $0x20] sm:$0xff] }
  0x37   :  { %2370 = vmatprep.subr.bf16.mxu0 %v2369_v16  ;;  %v2425_v15 = vpack.c.bf16 %v1069_v14, %v1068_v13 }
  0x39   :  { %2095 = vmatmul.mubr.msk.f32.gmra.mrb[4].mxu0 %vm316_vm1, %v302_v33  ;;  %v2385_v33 = vpack.c.bf16 %v877_v31, %v876_v30 }
  0x3a   :  { %2097 = vmatprep.mubr.msk.f32.mxu0 %vm316_vm1, %v303_v34  ;;  %2372 = vmatpush3.bf16.msra.mxu0 %v2369_v16  ;;  %v879_v34 = vld [vmem:[%s3231_s5 + $0x18] sm:$0xff]  ;;  %v1070_v16 = vld [vmem:[%s3183_s14 + $0x30] sm:$0xff] }
  0x3b   :  { %2386 = vmatprep.subr.bf16.mxu0 %v2385_v33 }
  0x3d   :  { %2098 = vmatmul.mubr.msk.f32.gmra.mrb[6].mxu0 %vm316_vm1, %v304_v35  ;;  %v2389_v35 = vpack.c.bf16 %v879_v34, %v878_v32  ;;  %v1179_v34 = vld [vmem:[%s3185_s16 + $0x8] sm:$0xff] }
  0xf2   :  { %v2057_v46 = vpop.f32.mrb[0].mxu0 }
  0xf3   :  { %v182_v47 = vadd.f32 %v2057_v46, %v1828_v45  ;;  %v176_v48 = vpop.f32.mrb[1].mxu0  ;;  %v887_v46 = vld [vmem:[%s3231_s5 + $0x58] sm:$0xff] }
  0xf4   :  { %v177_v49 = vadd.f32 %v1828_v45, %v176_v48  ;;  %v886_v45 = vld [vmem:[%s3231_s5 + $0x50] sm:$0xff]  ;;  %s2600_s5 = smov [#allocation2]  }
  0xf5   :  { %v1832_v50 = vmul.f32 -1.442695, %v182_v47  ;;  %s1817_s10 = sshll.u32 %s2600_s5, 4  ;;  %s1818_s10 = int_to_ptr.vmem [resolvable:$true] %s1817_s10 }
  0xf6   :  { %v1831_v51 = vmul.f32 -1.442695, %v177_v49  ;;  %p2581_p1 = scmp.lt.s32.totalorder %s1818_s10, %s1818_s10 }
  0xf7   :  { %2512 = vpow2.f32 %v1832_v50 }
  0xf8   :  { %2514 = vpow2.f32 %v1831_v51 }
  0xf9   :  { %v2860_v52 = vpop.f32.mrb[0].mxu1 }
  0xfa   :  { %v2862_v53 = vpop.f32.mrb[1].mxu1 }
 0x101   :  { %v2513_v54 = vpop.eup %2512 }
 0x102   :  { %v2515_v55 = vpop.eup %2514  ;;  %v192_v56 = vadd.f32 1.0, %v2513_v54 }
 0x103   :  { %v191_v57 = vadd.f32 1.0, %v2515_v55 }
 0x104   :  { %2516 = vrcp.f32 %v192_v56 }
 0x105   :  { %2518 = vrcp.f32 %v191_v57 }
 0x108   :  { %v2093_v58 = vpop.f32.mrb[2].mxu0 }
 0x109   :  { %v401_v59 = vpop.f32.mrb[3].mxu0 }
 0x10a   :  { %2112 = vmatprep.mubr.msk.f32.mxu1 %vm436_vm2, %v401_v59 }
 0x10b   :  { %2113 = vmatmul.mubr.msk.f32.vlgmr.msra.gmra.mrb[2].mxu1 %vm436_vm2, %v2093_v58 }
 0x10c   :  { %v2096_v60 = vpop.f32.mrb[4].mxu0 }
 0x10d   :  { %v411_v61 = vpop.f32.mrb[5].mxu0 }
 0x10e   :  { %v2517_v62 = vpop.eup %2516  ;;  %2115 = vmatprep.mubr.msk.f32.mxu1 %vm436_vm2, %v411_v61 }
 0x10f   :  { %v2519_v63 = vpop.eup %2518  ;;  %v2867_v0 = vmul.f32 %v2517_v62, %v182_v47  ;;  %2116 = vmatmul.mubr.msk.f32.gmra.mrb[4].mxu1 %vm436_vm2, %v2096_v60  ;;  %v2405_v47 = vpack.c.bf16 %v887_v46, %v886_v45  ;;  %v1186_v45 = vld [vmem:[%s3185_s16 + $0x40] sm:$0xff]  ;;  %v1187_v46 = vld [vmem:[%s3185_s16 + $0x48] sm:$0xff] }
 0x110   :  { %v2870_v1 = vmul.f32 %v2519_v63, %v177_v49  ;;  %v2099_v2 = vpop.f32.mrb[6].mxu0 }
 0x111   :  { %v421_v3 = vpop.f32.mrb[7].mxu0 }
 0x112   :  { %2118 = vmatprep.mubr.msk.f32.mxu1 %vm436_vm2, %v421_v3  ;;  %v2361_v5 = vpack.c.bf16 %v2867_v0, %v2870_v1  ;;  %v794_v3 = vld [vmem:[%s3230_s1 + $0x8] sm:$0xff] }
 0x113   :  { %2119 = vmatmul.mubr.msk.f32.gmra.mrb[6].mxu1 %vm436_vm2, %v2099_v2 }
 0x114   :  { %2362 = vmatprep.subr.bf16.mxu1 %v2361_v5  ;;  %2125 = vmatprep.mubr.msk.f32.mxu1 %vm556_vm3, %v550_v4  ;;  %v977_v4 = vld [vmem:[%s3182_s13] sm:$0xff] }
 0x115   :  { %2364 = vmatpush3.bf16.msra.mxu1 %v2361_v5  ;;  %v978_v5 = vld [vmem:[%s3182_s13 + $0x8] sm:$0xff] }
 0x118   :  { %2126 = vmatmul.mubr.msk.f32.vlgmr.msra.gmra.mrb[8].mxu1 %vm556_vm3, %v551_v6  ;;  %v2409_v6 = vpack.c.bf16 %v978_v5, %v977_v4 }
 0x119   :  { %2128 = vmatprep.mubr.msk.f32.mxu1 %vm556_vm3, %v552_v7  ;;  %v1064_v7 = vld [vmem:[%s3183_s14] sm:$0xff] }
 0x11c   :  { %2129 = vmatmul.mubr.msk.f32.gmra.mrb[10].mxu1 %vm556_vm3, %v553_v8  ;;  %v1065_v8 = vld [vmem:[%s3183_s14 + $0x8] sm:$0xff] }
 0x11d   :  { %2131 = vmatprep.mubr.msk.f32.mxu1 %vm556_vm3, %v554_v9  ;;  %v1066_v9 = vld [vmem:[%s3183_s14 + $0x10] sm:$0xff] }
 0x11e   :  { %v2421_v12 = vpack.c.bf16 %v1067_v11, %v1066_v9  ;;  %v1294_v9 = vld [vmem:[%s3187_s18 + $0x10] sm:$0xff] }
 0x120   :  { %2132 = vmatmul.mubr.msk.f32.gmra.mrb[12].mxu1 %vm556_vm3, %v555_v10  ;;  %v2417_v10 = vpack.c.bf16 %v1065_v8, %v1064_v7  ;;  %v1293_v7 = vld [vmem:[%s3187_s18 + $0x8] sm:$0xff] }
 0x121   :  { %2163 = vmatprep.mubr.msk.f32.mxu1 %vm436_vm2, %v793_v29 }
 0x1de   :  { %v2114_v17 = vpop.f32.mrb[2].mxu1 }
 0x1df   :  { %v521_v18 = vpop.f32.mrb[3].mxu1 }
 0x1e2   :  { %v2117_v19 = vpop.f32.mrb[4].mxu1 }
 0x1e3   :  { %v531_v20 = vpop.f32.mrb[5].mxu1 }
 0x1e6   :  { %v2120_v21 = vpop.f32.mrb[6].mxu1 }
 0x1e7   :  { %v541_v22 = vpop.f32.mrb[7].mxu1 }
 0x1eb   :  { %v2127_v23 = vpop.f32.mrb[8].mxu1 }
 0x1ec   :  { %v641_v24 = vpop.f32.mrb[9].mxu1 }
 0x1ed   :  { %2142 = vmatprep.mubr.msk.f32.mxu0 %vm103_vm0, %v641_v24 }
 0x1ee   :  { %2143 = vmatmul.mubr.msk.f32.vlgmr.msra.gmra.mrb[8].mxu0 %vm103_vm0, %v2127_v23  ;;  %v980_v23 = vld [vmem:[%s3182_s13 + $0x18] sm:$0xff] }
 0x1ef   :  { %v2130_v25 = vpop.f32.mrb[10].mxu1  ;;  %2388 = vmatpush3.bf16.msra.mxu0 %v2385_v33 }
 0x1f0   :  { %v651_v26 = vpop.f32.mrb[11].mxu1  ;;  %2390 = vmatprep.subr.bf16.mxu0 %v2389_v35 }
 0x1f1   :  { %2145 = vmatprep.mubr.msk.f32.mxu0 %vm103_vm0, %v651_v26 }
 0x1f2   :  { %2146 = vmatmul.mubr.msk.f32.gmra.mrb[10].mxu0 %vm103_vm0, %v2130_v25 }
 0x1f3   :  { %v2133_v27 = vpop.f32.mrb[12].mxu1  ;;  %2392 = vmatpush3.bf16.msra.mxu0 %v2389_v35 }
 0x1f4   :  { %v661_v28 = vpop.f32.mrb[13].mxu1  ;;  %2394 = vmatprep.subr.bf16.mxu0 %v2393_v38 }
 0x1f5   :  { %2148 = vmatprep.mubr.msk.f32.mxu0 %vm103_vm0, %v661_v28  ;;  %v1075_v28 = vld [vmem:[%s3183_s14 + $0x58] sm:$0xff] }
 0x1f6   :  { %2149 = vmatmul.mubr.msk.f32.gmra.mrb[12].mxu0 %vm103_vm0, %v2133_v27  ;;  %v1074_v27 = vld [vmem:[%s3183_s14 + $0x50] sm:$0xff] }
 0x1f7   :  { %2396 = vmatpush3.bf16.msra.mxu0 %v2393_v38  ;;  %v2437_v29 = vpack.c.bf16 %v1075_v28, %v1074_v27  ;;  %v2445_v38 = vpack.c.bf16 %v1181_v37, %v1180_v36  ;;  %v1398_v27 = vld [vmem:[%s3189_s20] sm:$0xff]  ;;  %v1399_v28 = vld [vmem:[%s3189_s20 + $0x8] sm:$0xff] }
 0x1f8   :  { %2398 = vmatprep.subr.bf16.mxu0 %v2397_v41 }
 0x1fb   :  { %2400 = vmatpush3.bf16.msra.mxu0 %v2397_v41  ;;  %v2449_v41 = vpack.c.bf16 %v1183_v40, %v1182_v39 }
 0x1fc   :  { %2402 = vmatprep.subr.bf16.mxu0 %v2401_v44 }
 0x1ff   :  { %2404 = vmatpush3.bf16.msra.mxu0 %v2401_v44  ;;  %v2453_v44 = vpack.c.bf16 %v1185_v43, %v1184_v42 }
 0x200   :  { %2406 = vmatprep.subr.bf16.mxu0 %v2405_v47 }
 0x203   :  { %2408 = vmatpush3.bf16.msra.mxu0 %v2405_v47  ;;  %v2457_v47 = vpack.c.bf16 %v1187_v46, %v1186_v45  ;;  %v1506_v46 = vld [vmem:[%s3191_s22] sm:$0xff] }
 0x204   :  { %2410 = vmatprep.subr.bf16.mxu0 %v2409_v6 }
 0x2c1   :  { %v2144_v48 = vpop.f32.mrb[8].mxu0 }
 0x2c2   :  { %v788_v49 = vmul.f32 %v2144_v48, %v2114_v17  ;;  %v758_v50 = vpop.f32.mrb[9].mxu0  ;;  %v1071_v17 = vld [vmem:[%s3183_s14 + $0x38] sm:$0xff]  ;;  %v1188_v48 = vld [vmem:[%s3185_s16 + $0x50] sm:$0xff] }
 0x2c3   :  { %v787_v51 = vmul.f32 %v758_v50, %v521_v18  ;;  %v2429_v18 = vpack.c.bf16 %v1071_v17, %v1070_v16 }
 0x2c5   :  { %v2373_v54 = vpack.c.bf16 %v788_v49, %v787_v51  ;;  %v2147_v55 = vpop.f32.mrb[10].mxu0  ;;  %v1189_v49 = vld [vmem:[%s3185_s16 + $0x58] sm:$0xff]  ;;  %v1869_v51 = vld [vmem:[%s3184_s15] ss:$0 sm:$0xff] }
 0x2c6   :  { %v790_v56 = vmul.f32 %v2147_v55, %v2117_v19  ;;  %v768_v57 = vpop.f32.mrb[11].mxu0  ;;  %v1072_v19 = vld [vmem:[%s3183_s14 + $0x40] sm:$0xff]  ;;  %v2461_v50 = vpack.c.bf16 %v1189_v49, %v1188_v48  ;;  %v1508_v49 = vld [vmem:[%s3191_s22 + $0x10] sm:$0xff] }
 0x2c7   :  { %v789_v58 = vmul.f32 %v768_v57, %v531_v20  ;;  %2374 = vmatprep.subr.bf16.mxu1 %v2373_v54  ;;  %v1073_v20 = vld [vmem:[%s3183_s14 + $0x48] sm:$0xff] }
 0x2c8   :  { %2376 = vmatpush3.bf16.msra.mxu1 %v2373_v54 }
 0x2c9   :  { %v2377_v59 = vpack.c.bf16 %v790_v56, %v789_v58  ;;  %v2150_v60 = vpop.f32.mrb[12].mxu0 }
 0x2ca   :  { %v792_v61 = vmul.f32 %v2150_v60, %v2120_v21  ;;  %v778_v62 = vpop.f32.mrb[13].mxu0  ;;  %v2433_v21 = vpack.c.bf16 %v1073_v20, %v1072_v19 }
 0x2cb   :  { %v791_v63 = vmul.f32 %v778_v62, %v541_v22  ;;  %2378 = vmatprep.subr.bf16.mxu1 %v2377_v59  ;;  %v979_v22 = vld [vmem:[%s3182_s13 + $0x10] sm:$0xff]  ;;  %s2576_s13 = scalar_lea.vmem %s1818_s10, 256 }
 0x2cc   :  { %2380 = vmatpush3.bf16.msra.mxu1 %v2377_v59  ;;  %v2413_v26 = vpack.c.bf16 %v980_v23, %v979_v22  ;;  %p2577_p0 = scmp.ne.s32.totalorder %s1818_s10, %s2576_s13  ;;  %p2582_p2 = scmp.lt.s32.totalorder %s2576_s13, %s2576_s13 }
 0x2cd   :  { %v2381_v2 = vpack.c.bf16 %v792_v61, %v791_v63 }
 0x2ce   :  { %p2583_p3 = por %p2582_p2, %p2581_p1 }
 0x2cf   :  { %2382 = vmatprep.subr.bf16.mxu1 %v2381_v2 }
 0x2d0   :  { %2384 = vmatpush3.bf16.msra.mxu1 %v2381_v2  ;;  %p2584_p4 = pnand %p2583_p3, %p2577_p0 }
 0x2d1   :  { %2418 = vmatprep.subr.bf16.mxu1 %v2417_v10 }
 0x2d3   :  { %2164 = vmatmul.mubr.msk.f32.vlgmr.msra.gmra.mrb[14].mxu1 %vm436_vm2, %v794_v3 }
 0x2d4   :  { %2420 = vmatpush3.bf16.msra.mxu1 %v2417_v10  ;;  %v1295_v10 = vld [vmem:[%s3187_s18 + $0x18] sm:$0xff] }
 0x2d5   :  { %2422 = vmatprep.subr.bf16.mxu1 %v2421_v12  ;;  %v2469_v11 = vpack.c.bf16 %v1295_v10, %v1294_v9 }
 0x2d8   :  { %2424 = vmatpush3.bf16.msra.mxu1 %v2421_v12  ;;  %v1874_v12 = vld [vmem:[%s3186_s17] ss:$0 sm:$0xff] }
 0x2d9   :  { %2426 = vmatprep.subr.bf16.mxu1 %v2425_v15 }
 0x2dc   :  { %2428 = vmatpush3.bf16.msra.mxu1 %v2425_v15 }
 0x2dd   :  { %2430 = vmatprep.subr.bf16.mxu1 %v2429_v18 }
 0x2e0   :  { %2432 = vmatpush3.bf16.msra.mxu1 %v2429_v18 }
 0x2e1   :  { %2434 = vmatprep.subr.bf16.mxu1 %v2433_v21 }
 0x2e4   :  { %2436 = vmatpush3.bf16.msra.mxu1 %v2433_v21 }
 0x2e5   :  { %2438 = vmatprep.subr.bf16.mxu1 %v2437_v29 }
 0x2e8   :  { %2440 = vmatpush3.bf16.msra.mxu1 %v2437_v29  ;;  %v2473_v29 = vpack.c.bf16 %v1399_v28, %v1398_v27 }
 0x3a6   :  { %v2165_v24 = vpop.f32.mrb[14].mxu1 }
 0x3a7   :  { %v867_v25 = vpop.f32.mrb[15].mxu1 }
 0x3a8   :  { %2190 = vmatprep.mubr.msk.f32.mxu0 %vm895_vm4, %v867_v25 }
 0x3a9   :  { %2191 = vmatmul.mubr.msk.f32.vlgmr.msra.gmra.mrb[14].mxu0 %vm895_vm4, %v2165_v24 }
 0x3aa   :  { %2412 = vmatpush3.bf16.msra.mxu0 %v2409_v6  ;;  %2201 = vmatprep.mubr.msk.f32.mxu0 %vm103_vm0, %v2870_v1  ;;  %v1864_v1 = vld [vmem:[%s3232_s9] ss:$0 sm:$0xff] }
 0x3ab   :  { %2414 = vmatprep.subr.bf16.mxu0 %v2413_v26  ;;  %v1292_v6 = vld [vmem:[%s3187_s18] sm:$0xff] }
 0x3ac   :  { %v2465_v8 = vpack.c.bf16 %v1293_v7, %v1292_v6 }
 0x3ae   :  { %2416 = vmatpush3.bf16.msra.mxu0 %v2413_v26 }
 0x3af   :  { %2466 = vmatprep.subr.bf16.mxu0 %v2465_v8 }
 0x3b1   :  { %2202 = vmatmul.mubr.msk.f32.vlgmr.msra.gmra.mrb[14].mxu0 %vm103_vm0, %v2867_v0  ;;  %v1178_v0 = vld [vmem:[%s3185_s16] sm:$0xff] }
 0x3b2   :  { %v2441_v35 = vpack.c.bf16 %v1179_v34, %v1178_v0  ;;  %2468 = vmatpush3.bf16.msra.mxu0 %v2465_v8 }
 0x3b3   :  { %2470 = vmatprep.subr.bf16.mxu0 %v2469_v11 }
 0x3b4   :  { %2442 = vmatprep.subr.bf16.mxu1 %v2441_v35 }
 0x3b6   :  { %2472 = vmatpush3.bf16.msra.mxu0 %v2469_v11 }
 0x3b7   :  { %2474 = vmatprep.subr.bf16.mxu0 %v2473_v29 }
 0x484   :  { %v2203_v30 = vpop.f32.mrb[14].mxu0 }
 0x485   :  { %v1053_v31 = vpop.f32.mrb[15].mxu0  ;;  %v2505_v33 = vadd.f32 %v2203_v30, %v1864_v1  ;;  %v1401_v30 = vld [vmem:[%s3189_s20 + $0x18] sm:$0xff] }
 0x486   :  { %v2506_v32 = vadd.f32 %v1864_v1, %v1053_v31  ;;  %v1400_v1 = vld [vmem:[%s3189_s20 + $0x10] sm:$0xff] }
 0x487   :  { %v2477_v31 = vpack.c.bf16 %v1401_v30, %v1400_v1 }
 0x488   :  { %2228 = vmatprep.mubr.msk.f32.mxu1 %vm895_vm4, %v2506_v32  ;;  %v1879_v32 = vld [vmem:[%s3188_s19] ss:$0 sm:$0xff] }
 0x489   :  { %2229 = vmatmul.mubr.msk.f32.vlgmr.msra.gmra.mrb[16].mxu1 %vm895_vm4, %v2505_v33 }
 0x48a   :  { %2444 = vmatpush3.bf16.msra.mxu1 %v2441_v35 }
 0x48b   :  { %2446 = vmatprep.subr.bf16.mxu1 %v2445_v38 }
 0x48e   :  { %2448 = vmatpush3.bf16.msra.mxu1 %v2445_v38 }
 0x48f   :  { %2450 = vmatprep.subr.bf16.mxu1 %v2449_v41 }
 0x492   :  { %2452 = vmatpush3.bf16.msra.mxu1 %v2449_v41 }
 0x493   :  { %2454 = vmatprep.subr.bf16.mxu1 %v2453_v44 }
 0x496   :  { %2456 = vmatpush3.bf16.msra.mxu1 %v2453_v44 }
 0x497   :  { %2458 = vmatprep.subr.bf16.mxu1 %v2457_v47 }
 0x49a   :  { %2460 = vmatpush3.bf16.msra.mxu1 %v2457_v47  ;;  %v1507_v47 = vld [vmem:[%s3191_s22 + $0x8] sm:$0xff] }
 0x49b   :  { %2462 = vmatprep.subr.bf16.mxu1 %v2461_v50  ;;  %v2481_v48 = vpack.c.bf16 %v1507_v47, %v1506_v46 }
 0x49e   :  { %2464 = vmatpush3.bf16.msra.mxu1 %v2461_v50  ;;  %v1509_v50 = vld [vmem:[%s3191_s22 + $0x18] sm:$0xff] }
 0x55c   :  { %v2230_v54 = vpop.f32.mrb[16].mxu1 }
 0x55d   :  { %v1161_v55 = vadd.f32 %v2230_v54, %v1869_v51  ;;  %v1155_v56 = vpop.f32.mrb[17].mxu1  ;;  %v1833_v54 = vld [vmem:[%s3233_s4] ss:$0 sm:$0xff] }
 0x55e   :  { %v1156_v57 = vadd.f32 %v1869_v51, %v1155_v56  ;;  %v2485_v51 = vpack.c.bf16 %v1509_v50, %v1508_v49  ;;  %v277_v56 = vadd.f32 %v1833_v54, %v2862_v53 }
 0x55f   :  { %v1873_v58 = vmul.f32 -1.442695, %v1161_v55 }
 0x560   :  { %v1872_v59 = vmul.f32 -1.442695, %v1156_v57 }
 0x561   :  { %2520 = vpow2.f32 %v1873_v58  ;;  %v1836_v58 = vmul.f32 -1.442695, %v277_v56 }
 0x562   :  { %2522 = vpow2.f32 %v1872_v59  ;;  %v1884_v59 = vld [vmem:[%s3190_s21] ss:$0 sm:$0xff] }
 0x56b   :  { %v2521_v60 = vpop.eup %2520 }
 0x56c   :  { %v2523_v61 = vpop.eup %2522  ;;  %v1171_v62 = vadd.f32 1.0, %v2521_v60 }
 0x56d   :  { %v1170_v63 = vadd.f32 1.0, %v2523_v61 }
 0x56e   :  { %2524 = vrcp.f32 %v1171_v62 }
 0x56f   :  { %2526 = vrcp.f32 %v1170_v63 }
 0x578   :  { %v2525_v2 = vpop.eup %2524 }
 0x579   :  { %v2527_v3 = vpop.eup %2526  ;;  %v1177_v5 = vmul.f32 %v2525_v2, %v1161_v55  ;;  %v282_v55 = vadd.f32 %v2860_v52, %v1833_v54 }
 0x57a   :  { %v1176_v4 = vmul.f32 %v2527_v3, %v1156_v57 }
 0x57b   :  { %v1837_v57 = vmul.f32 -1.442695, %v282_v55 }
 0x57c   :  { %2255 = vmatprep.mubr.msk.f32.mxu1 %vm895_vm4, %v1176_v4 }
 0x57d   :  { %2256 = vmatmul.mubr.msk.f32.vlgmr.msra.gmra.mrb[18].mxu1 %vm895_vm4, %v1177_v5 }
 0x650   :  { %v2257_v13 = vpop.f32.mrb[18].mxu1 }
 0x651   :  { %v1275_v14 = vadd.f32 %v2257_v13, %v1874_v12  ;;  %v1269_v15 = vpop.f32.mrb[19].mxu1 }
 0x652   :  { %v1270_v16 = vadd.f32 %v1874_v12, %v1269_v15 }
 0x653   :  { %v1878_v17 = vmul.f32 -1.442695, %v1275_v14 }
 0x654   :  { %v1877_v18 = vmul.f32 -1.442695, %v1270_v16 }
 0x655   :  { %2528 = vpow2.f32 %v1878_v17 }
 0x656   :  { %2530 = vpow2.f32 %v1877_v18 }
 0x65f   :  { %v2529_v19 = vpop.eup %2528 }
 0x660   :  { %v2531_v20 = vpop.eup %2530  ;;  %v1285_v21 = vadd.f32 1.0, %v2529_v19 }
 0x661   :  { %v1284_v22 = vadd.f32 1.0, %v2531_v20  ;;  %v1612_v20 = vld [vmem:[%s3193_s24] sm:$0xff] }
 0x662   :  { %2532 = vrcp.f32 %v1285_v21  ;;  %v1613_v21 = vld [vmem:[%s3193_s24 + $0x8] sm:$0xff] }
 0x663   :  { %2534 = vrcp.f32 %v1284_v22  ;;  %v2489_v22 = vpack.c.bf16 %v1613_v21, %v1612_v20 }
 0x665   :  { %2490 = vmatprep.subr.bf16.mxu1 %v2489_v22 }
 0x666   :  { %2492 = vmatpush3.bf16.msra.mxu1 %v2489_v22 }
 0x66c   :  { %v2533_v23 = vpop.eup %2532 }
 0x66d   :  { %v2535_v24 = vpop.eup %2534  ;;  %v1291_v26 = vmul.f32 %v2533_v23, %v1275_v14  ;;  %v1614_v23 = vld [vmem:[%s3193_s24 + $0x10] sm:$0xff] }
 0x66e   :  { %v1290_v25 = vmul.f32 %v2535_v24, %v1270_v16  ;;  %v1615_v24 = vld [vmem:[%s3193_s24 + $0x18] sm:$0xff] }
 0x670   :  { %2266 = vmatprep.mubr.msk.f32.mxu0 %vm103_vm0, %v1290_v25  ;;  %v2493_v25 = vpack.c.bf16 %v1615_v24, %v1614_v23 }
 0x671   :  { %2267 = vmatmul.mubr.msk.f32.vlgmr.msra.gmra.mrb[16].mxu0 %vm103_vm0, %v1291_v26  ;;  %v1889_v26 = vld [vmem:[%s3192_s23] ss:$0 sm:$0xff] }
 0x672   :  { %2476 = vmatpush3.bf16.msra.mxu0 %v2473_v29  ;;  %2494 = vmatprep.subr.bf16.mxu1 %v2493_v25 }
 0x673   :  { %2478 = vmatprep.subr.bf16.mxu0 %v2477_v31  ;;  %2496 = vmatpush3.bf16.msra.mxu1 %v2493_v25 }
 0x676   :  { %2480 = vmatpush3.bf16.msra.mxu0 %v2477_v31 }
 0x677   :  { %2482 = vmatprep.subr.bf16.mxu0 %v2481_v48 }
 0x744   :  { %v2268_v33 = vpop.f32.mrb[16].mxu0 }
 0x745   :  { %v1381_v0 = vadd.f32 %v2268_v33, %v1879_v32  ;;  %v1375_v34 = vpop.f32.mrb[17].mxu0 }
 0x746   :  { %v1376_v35 = vadd.f32 %v1879_v32, %v1375_v34 }
 0x747   :  { %v1883_v36 = vmul.f32 -1.442695, %v1381_v0 }
 0x748   :  { %v1882_v37 = vmul.f32 -1.442695, %v1376_v35 }
 0x749   :  { %2536 = vpow2.f32 %v1883_v36 }
 0x74a   :  { %2538 = vpow2.f32 %v1882_v37 }
 0x753   :  { %v2537_v38 = vpop.eup %2536 }
 0x754   :  { %v2539_v39 = vpop.eup %2538  ;;  %v1391_v40 = vadd.f32 1.0, %v2537_v38 }
 0x755   :  { %v1390_v41 = vadd.f32 1.0, %v2539_v39  ;;  %v1718_v39 = vld [vmem:[%s3195_s26] sm:$0xff] }
 0x756   :  { %2540 = vrcp.f32 %v1391_v40  ;;  %v1719_v40 = vld [vmem:[%s3195_s26 + $0x8] sm:$0xff] }
 0x757   :  { %2542 = vrcp.f32 %v1390_v41  ;;  %v2497_v41 = vpack.c.bf16 %v1719_v40, %v1718_v39 }
 0x758   :  { %2544 = vpow2.f32 %v1837_v57 }
 0x759   :  { %2546 = vpow2.f32 %v1836_v58 }
 0x760   :  { %v2541_v42 = vpop.eup %2540 }
 0x761   :  { %v2543_v43 = vpop.eup %2542  ;;  %v1397_v45 = vmul.f32 %v2541_v42, %v1381_v0  ;;  %v1720_v42 = vld [vmem:[%s3195_s26 + $0x10] sm:$0xff] }
 0x762   :  { %v1396_v44 = vmul.f32 %v2543_v43, %v1376_v35  ;;  %v2545_v4 = vpop.eup %2544  ;;  %v1721_v43 = vld [vmem:[%s3195_s26 + $0x18] sm:$0xff] }
 0x763   :  { %v2547_v52 = vpop.eup %2546  ;;  %v292_v5 = vadd.f32 1.0, %v2545_v4 }
 0x764   :  { %2277 = vmatprep.mubr.msk.f32.mxu0 %vm103_vm0, %v1396_v44  ;;  %v291_v53 = vadd.f32 1.0, %v2547_v52  ;;  %v2501_v44 = vpack.c.bf16 %v1721_v43, %v1720_v42 }
 0x765   :  { %2278 = vmatmul.mubr.msk.f32.vlgmr.msra.gmra.mrb[18].mxu0 %vm103_vm0, %v1397_v45  ;;  %v1894_v45 = vld [vmem:[%s3194_s25] ss:$0 sm:$0xff] }
 0x766   :  { %2484 = vmatpush3.bf16.msra.mxu0 %v2481_v48 }
 0x767   :  { %2486 = vmatprep.subr.bf16.mxu0 %v2485_v51 }
 0x76a   :  { %2488 = vmatpush3.bf16.msra.mxu0 %v2485_v51 }
 0x76b   :  { %2498 = vmatprep.subr.bf16.mxu0 %v2497_v41 }
 0x838   :  { %v2279_v60 = vpop.f32.mrb[18].mxu0 }
 0x839   :  { %v1487_v61 = vadd.f32 %v2279_v60, %v1884_v59  ;;  %v1481_v62 = vpop.f32.mrb[19].mxu0 }
 0x83a   :  { %v1482_v63 = vadd.f32 %v1884_v59, %v1481_v62  ;;  %v1899_v62 = vld [vmem:[%s3196_s27] ss:$0 sm:$0xff] }
 0x83b   :  { %v1888_v2 = vmul.f32 -1.442695, %v1487_v61 }
 0x83c   :  { %v1887_v3 = vmul.f32 -1.442695, %v1482_v63 }
 0x83d   :  { %2548 = vpow2.f32 %v1888_v2 }
 0x83e   :  { %2550 = vpow2.f32 %v1887_v3 }
 0x83f   :  { %2552 = vrcp.f32 %v292_v5 }
 0x840   :  { %2554 = vrcp.f32 %v291_v53 }
 0x847   :  { %v2549_v6 = vpop.eup %2548 }
 0x848   :  { %v2551_v7 = vpop.eup %2550  ;;  %v1497_v8 = vadd.f32 1.0, %v2549_v6 }
 0x849   :  { %v1496_v9 = vadd.f32 1.0, %v2551_v7  ;;  %v2553_v10 = vpop.eup %2552 }
 0x84a   :  { %2556 = vrcp.f32 %v1497_v8  ;;  %v2555_v11 = vpop.eup %2554  ;;  %v298_v14 = vmul.f32 %v2553_v10, %v282_v55 }
 0x84b   :  { %2558 = vrcp.f32 %v1496_v9  ;;  %v297_v16 = vmul.f32 %v2555_v11, %v277_v56 }
 0x854   :  { %v2557_v12 = vpop.eup %2556 }
 0x855   :  { %v2559_v13 = vpop.eup %2558  ;;  %v1503_v15 = vmul.f32 %v2557_v12, %v1487_v61 }
 0x856   :  { %v1502_v17 = vmul.f32 %v2559_v13, %v1482_v63 }
 0x857   :  { %v1505_v18 = vadd.f32 %v1503_v15, %v298_v14 }
 0x858   :  { %v1504_v19 = vadd.f32 %v1502_v17, %v297_v16 }
 0x85a   :  { %2288 = vmatprep.mubr.msk.f32.mxu0 %vm103_vm0, %v1504_v19 }
 0x85b   :  { %2289 = vmatmul.mubr.msk.f32.vlgmr.msra.gmra.mrb[20].mxu0 %vm103_vm0, %v1505_v18 }
 0x85c   :  { %2500 = vmatpush3.bf16.msra.mxu0 %v2497_v41 }
 0x85d   :  { %2502 = vmatprep.subr.bf16.mxu0 %v2501_v44 }
 0x860   :  { %2504 = vmatpush3.bf16.msra.mxu0 %v2501_v44 }
 0x92e   :  { %v2290_v27 = vpop.f32.mrb[20].mxu0 }
 0x92f   :  { %v1595_v28 = vadd.f32 %v2290_v27, %v1889_v26  ;;  %v1589_v29 = vpop.f32.mrb[21].mxu0 }
 0x930   :  { %v1590_v1 = vadd.f32 %v1889_v26, %v1589_v29 }
 0x931   :  { %v1893_v30 = vmul.f32 -1.442695, %v1595_v28 }
 0x932   :  { %v1892_v31 = vmul.f32 -1.442695, %v1590_v1 }
 0x933   :  { %2560 = vpow2.f32 %v1893_v30 }
 0x934   :  { %2562 = vpow2.f32 %v1892_v31 }
 0x93d   :  { %v2561_v32 = vpop.eup %2560 }
 0x93e   :  { %v2563_v33 = vpop.eup %2562  ;;  %v1605_v0 = vadd.f32 1.0, %v2561_v32 }
 0x93f   :  { %v1604_v34 = vadd.f32 1.0, %v2563_v33 }
 0x940   :  { %2564 = vrcp.f32 %v1605_v0 }
 0x941   :  { %2566 = vrcp.f32 %v1604_v34 }
 0x94a   :  { %v2565_v35 = vpop.eup %2564 }
 0x94b   :  { %v2567_v36 = vpop.eup %2566  ;;  %v1611_v38 = vmul.f32 %v2565_v35, %v1595_v28 }
 0x94c   :  { %v1610_v37 = vmul.f32 %v2567_v36, %v1590_v1 }
 0x94e   :  { %2299 = vmatprep.mubr.msk.f32.mxu1 %vm103_vm0, %v1610_v37 }
 0x94f   :  { %2300 = vmatmul.mubr.msk.f32.vlgmr.msra.gmra.mrb[20].mxu1 %vm103_vm0, %v1611_v38 }
 0xa22   :  { %v2301_v46 = vpop.f32.mrb[20].mxu1 }
 0xa23   :  { %v1701_v47 = vadd.f32 %v2301_v46, %v1894_v45  ;;  %v1695_v48 = vpop.f32.mrb[21].mxu1 }
 0xa24   :  { %v1696_v49 = vadd.f32 %v1894_v45, %v1695_v48 }
 0xa25   :  { %v1898_v50 = vmul.f32 -1.442695, %v1701_v47 }
 0xa26   :  { %v1897_v51 = vmul.f32 -1.442695, %v1696_v49 }
 0xa27   :  { %2568 = vpow2.f32 %v1898_v50 }
 0xa28   :  { %2570 = vpow2.f32 %v1897_v51 }
 0xa31   :  { %v2569_v54 = vpop.eup %2568 }
 0xa32   :  { %v2571_v55 = vpop.eup %2570  ;;  %v1711_v56 = vadd.f32 1.0, %v2569_v54 }
 0xa33   :  { %v1710_v57 = vadd.f32 1.0, %v2571_v55 }
 0xa34   :  { %2572 = vrcp.f32 %v1711_v56 }
 0xa35   :  { %2574 = vrcp.f32 %v1710_v57 }
 0xa3e   :  { %v2573_v58 = vpop.eup %2572 }
 0xa3f   :  { %v2575_v59 = vpop.eup %2574  ;;  %v1717_v61 = vmul.f32 %v2573_v58, %v1701_v47 }
 0xa40   :  { %v1716_v60 = vmul.f32 %v2575_v59, %v1696_v49 }
 0xa42   :  { %2310 = vmatprep.mubr.msk.f32.mxu0 %vm103_vm0, %v1716_v60 }
 0xa43   :  { %2311 = vmatmul.mubr.msk.f32.vlgmr.msra.gmra.mrb[22].mxu0 %vm103_vm0, %v1717_v61 }
 0xb16   :  { %v2312_v63 = vpop.f32.mrb[22].mxu0 }
 0xb17   :  { %v1807_v2 = vadd.f32 %v2312_v63, %v1899_v62  ;;  %v1801_v3 = vpop.f32.mrb[23].mxu0 }
 0xb18   :  { %v1802_v4 = vadd.f32 %v1899_v62, %v1801_v3 }
 0xb19   :  { %1811 = vst.msk [vmem:[#allocation2 + $0x8] sm:$0xff] %vm103_vm0, %v1807_v2 }
 0xb1a   :  { %1810 = vst.msk [vmem:[#allocation2] sm:$0xff] %vm103_vm0, %v1802_v4 }
 0xb1b   :  { %2587 = shalt.err (!%p2584_p4)
}
 0xb1c   :  { %s2588_s4 = scalar_lea.hbm %s3197_s28, 256 }
 0xb1d   :  { %p2589_p5 = scmp.ne.s32.totalorder %s3197_s28, %s2588_s4  ;;  %p2592_p6 = scmp.lt.u32.totalorder %s2588_s4, %s3197_s28 }
 0xb1f   :  { %p2594_p7 = pnand %p2592_p6, %p2589_p5 }
 0xb21   :  { %2597 = shalt.err (!%p2594_p7)
}
 0xb22   :  { %s2601_s17 = smov 128   ;;  %s2602_s18 = smov 8  }
 0xb23   :  { %1823 = dma.vmem_to_hbm [thread:$0]  %s1818_s10, 256, %s3197_s28, [#allocation3], %s2601_s17, %s2601_s17, %s2602_s18  }
 0xb24   :  { %2598 = dma.done.wait [#allocation3], 256  }
 0xb25   :  { %2599 = vsyncadd [#allocation3], 4294967040 }
 0xb26   :  { %1827 = vsyncpa [#allocation3], 1 }

</bundles_post_ra>
